<compile_context>
chip_gen: v6e
topology: v6e:2x2x1
jax: 0.10.0
libtpu: 0.0.40
codegen_flags: <defaults>
</compile_context>

<pallas_src>
import functools

import jax
import jax.numpy as jnp
from jax.experimental import pallas as pl
from jax.experimental.pallas import tpu as pltpu


def _layer_norm(v, g, b, eps=1e-5):
    mu = jnp.mean(v, axis=-1, keepdims=True)
    var = jnp.mean((v - mu) ** 2, axis=-1, keepdims=True)
    return (v - mu) * jax.lax.rsqrt(var + eps) * g + b


def _gelu_tanh(x):
    c = 0.7978845608028654  # sqrt(2/pi)
    return 0.5 * x * (1.0 + jnp.tanh(c * (x + 0.044715 * x * x * x)))


def decoder_layer_kernel(x_ref, qkm_ref, km_ref, pos_ref,
                         ln1g_ref, ln1b_ref,
                         wq_ref, bq_ref, wk_ref, bk_ref, wv_ref, bv_ref,
                         wo_ref, bo_ref,
                         ln2g_ref, ln2b_ref,
                         w1_ref, b1_ref, w2_ref, b2_ref,
                         out_ref,
                         hp_scr, kT_scr, v_scr, ctx_scr,
                         *, n_head, q_tile, mxu_dtype):
    f32 = jnp.float32
    S = x_ref.shape[1]
    E = x_ref.shape[2]
    Dh = E // n_head
    scale = 1.0 / (Dh ** 0.5)

    # ---------------- per-batch K/V cache (filled once at qi == 0) -----------
    # Requires grid axis 1 to be "arbitrary": later q-tiles of the same batch
    # element reuse hp_scr / kT_scr / v_scr.
    @pl.when(pl.program_id(1) == 0)
    def _fill_kv_cache():
        x_full = x_ref[0]                                        # (S, E) fp32
        h = _layer_norm(x_full, ln1g_ref[...], ln1b_ref[...])    # fp32
        hp_m = (h + pos_ref[0]).astype(mxu_dtype)                # shared q/k input
        hp_scr[...] = hp_m
        # Fused bias-add + bf16 cast: fp32 full-seq K/V copies are never kept.
        k = jnp.dot(hp_m, wk_ref[...], preferred_element_type=f32) + bk_ref[...]
        # K stored pre-transposed (E, S): one XLU transpose per batch instead
        # of one per head per q-tile.
        kT_scr[...] = k.astype(mxu_dtype).T
        v = jnp.dot(h.astype(mxu_dtype), wv_ref[...],
                    preferred_element_type=f32) + bv_ref[...]
        v_scr[...] = v.astype(mxu_dtype)

    # ---------------- this q-tile -------------------------------------------
    q0 = pl.multiple_of(pl.program_id(1) * q_tile, q_tile)
    x_q = x_ref[0, pl.ds(q0, q_tile), :]                         # (q_tile, E) fp32
    hpq_m = hp_scr[pl.ds(q0, q_tile), :]                         # (q_tile, E) bf16

    q = jnp.dot(hpq_m, wq_ref[...], preferred_element_type=f32) + bq_ref[...]
    q_m = q.astype(mxu_dtype)

    # Combined additive mask: streamed bf16, upcast to fp32 for softmax math
    # (mask values are 0 / -1e4 sentinels -> bf16 rounding has no effect).
    mask = qkm_ref[0].astype(f32) + km_ref[0].astype(f32)        # (q_tile, S)

    # Per-head lane-sliced attention.  No (H,S,S) materialization; ctx_h is
    # written into a lane-contiguous bf16 scratch at static column offsets so
    # the output projection is a single full-E contraction after the loop.
    # n_head is a compile-time constant; static slices bound per-iteration live
    # ranges and avoid dynamic lane-offset lowering restrictions.
    for hh in range(n_head):
        lo = hh * Dh
        qh = q_m[:, lo:lo + Dh]                                  # (q_tile, Dh)
        khT = kT_scr[pl.ds(lo, Dh), :]                           # (Dh, S)
        vh = v_scr[:, pl.ds(lo, Dh)]                             # (S, Dh)
        s = jnp.dot(qh, khT, preferred_element_type=f32)         # (q_tile, S)
        s = s * scale + mask
        m = jnp.max(s, axis=-1, keepdims=True)
        p = jnp.exp(s - m)
        l = jnp.sum(p, axis=-1, keepdims=True)
        p = p * pl.reciprocal(l, approx=True)                    # EUP, not VALU
        # TODO(synk): attention dropout (p=0.1) omitted — identity in eval mode.
        ctx = jnp.dot(p.astype(mxu_dtype), vh,
                      preferred_element_type=f32)                # (q_tile, Dh)
        ctx_scr[:, pl.ds(lo, Dh)] = ctx.astype(mxu_dtype)

    # Single output projection: full-E contraction (full MXU depth).
    attn = jnp.dot(ctx_scr[...], wo_ref[...],
                   preferred_element_type=f32) + bo_ref[...]
    x1 = x_q + attn

    # ---------------- FFN (pre-LN) -------------------------------------------
    h2 = _layer_norm(x1, ln2g_ref[...], ln2b_ref[...])
    f = jnp.dot(h2.astype(mxu_dtype), w1_ref[...],
                preferred_element_type=f32) + b1_ref[...]
    f = _gelu_tanh(f)
    f = jnp.dot(f.astype(mxu_dtype), w2_ref[...],
                preferred_element_type=f32) + b2_ref[...]
    out_ref[0] = (x1 + f).astype(out_ref.dtype)


PARAM_ORDER = ('ln1_g', 'ln1_b', 'wq', 'bq', 'wk', 'bk', 'wv', 'bv',
               'wo', 'bo', 'ln2_g', 'ln2_b', 'w1', 'b1', 'w2', 'b2')
_MATMUL_WEIGHTS = ('wq', 'wk', 'wv', 'wo', 'w1', 'w2')


def _tiling_for_device(S):
    """Per-generation q_tile / scoped-VMEM limit (v7x-class: 64 MiB VMEM)."""
    try:
        vmem_cap = pltpu.get_tpu_info().vmem_capacity_bytes
    except Exception:
        vmem_cap = 64 * 1024 * 1024          # conservative default
    if vmem_cap <= 64 * 1024 * 1024:         # v7x-class
        q_cap, vmem_limit = 256, 48 * 1024 * 1024
    else:                                    # v5e / v6e (128 MiB VMEM)
        q_cap, vmem_limit = 512, 100 * 1024 * 1024
    q_tile = S if S <= q_cap else q_cap
    return q_tile, vmem_limit


def gpt_decoder_layer(decoder_embed, decoder_k_mask, decoder_qk_mask,
                      decoder_pos_embed, params, n_head,
                      q_tile=None, mxu_dtype=jnp.bfloat16):
    """decoder_embed/pos: NCHW (B, E, 1, S); qk_mask: (B, S, S); k_mask: (B, 1, S)."""
    B, E, _, S = decoder_embed.shape
    assert E % n_head == 0

    # NCHW -> (B, S, E): embedding dim on the 128-lane axis.
    x = jnp.transpose(decoder_embed[:, :, 0, :], (0, 2, 1))        # (B, S, E)
    pos = jnp.transpose(decoder_pos_embed[:, :, 0, :], (0, 2, 1))  # (1, S, E)

    auto_limit = None
    if q_tile is None:
        q_tile, auto_limit = _tiling_for_device(S)
    vmem_limit = auto_limit if auto_limit is not None else 48 * 1024 * 1024
    assert S % q_tile == 0
    nq = S // q_tile
    mxu_dtype = jnp.dtype(mxu_dtype)

    # Masks streamed in bf16 (the only quadratic HBM stream); upcast in-kernel.
    qk_mask = decoder_qk_mask.astype(mxu_dtype)
    k_mask = decoder_k_mask.astype(mxu_dtype)

    # Matmul weights go to the MXU in bf16; biases/LN params stay fp32.
    param_list = [params[n].astype(mxu_dtype) if n in _MATMUL_WEIGHTS
                  else params[n] for n in PARAM_ORDER]

    # Weights/biases/pos: whole-array VMEM residents (DMA'd once, not
    # double-buffered per grid step).
    # TODO(synk): at production F, stream w1/w2 in F-slabs instead (v7x VMEM).
    wspec = pl.BlockSpec(memory_space=pltpu.MemorySpace.VMEM)

    in_specs = [
        pl.BlockSpec((1, S, E), lambda b, qi: (b, 0, 0)),        # x (full seq / batch)
        pl.BlockSpec((1, q_tile, S), lambda b, qi: (b, qi, 0)),  # qk_mask rows
        pl.BlockSpec((1, 1, S), lambda b, qi: (b, 0, 0)),        # k_mask
        wspec,                                                   # pos (resident)
    ] + [wspec] * len(param_list)

    grid_spec = pltpu.PrefetchScalarGridSpec(
        num_scalar_prefetch=0,
        grid=(B, nq),
        in_specs=in_specs,
        out_specs=pl.BlockSpec((1, q_tile, E), lambda b, qi: (b, qi, 0)),
        scratch_shapes=[
            pltpu.VMEM((S, E), mxu_dtype),       # hp = LN(x)+pos (shared q/k input)
            pltpu.VMEM((E, S), mxu_dtype),       # K^T cache
            pltpu.VMEM((S, E), mxu_dtype),       # V cache
            pltpu.VMEM((q_tile, E), mxu_dtype),  # per-head ctx assembly
        ],
    )

    out = pl.pallas_call(
        functools.partial(decoder_layer_kernel, n_head=n_head, q_tile=q_tile,
                          mxu_dtype=mxu_dtype),
        out_shape=jax.ShapeDtypeStruct((B, S, E), x.dtype),
        grid_spec=grid_spec,
        compiler_params=pltpu.CompilerParams(
            # Axis 1 must be "arbitrary": the per-batch K/V cache is filled at
            # qi == 0 and reused by later q-tiles.  Axis 0 stays "parallel".
            dimension_semantics=("parallel", "arbitrary"),
            vmem_limit_bytes=vmem_limit),
    )(x, qk_mask, k_mask, pos, *param_list)

    # back to NCHW (B, E, 1, S)
    return jnp.transpose(out, (0, 2, 1))[:, :, None, :]


def init_params(key, E, F):
    ks = jax.random.split(key, 8)
    s = 0.05
    return {
        'ln1_g': jnp.ones((1, E), jnp.float32),
        'ln1_b': jnp.zeros((1, E), jnp.float32),
        'wq': jax.random.normal(ks[0], (E, E), jnp.float32) * s,
        'bq': jnp.zeros((1, E), jnp.float32),
        'wk': jax.random.normal(ks[1], (E, E), jnp.float32) * s,
        'bk': jnp.zeros((1, E), jnp.float32),
        'wv': jax.random.normal(ks[2], (E, E), jnp.float32) * s,
        'bv': jnp.zeros((1, E), jnp.float32),
        'wo': jax.random.normal(ks[3], (E, E), jnp.float32) * s,
        'bo': jnp.zeros((1, E), jnp.float32),
        'ln2_g': jnp.ones((1, E), jnp.float32),
        'ln2_b': jnp.zeros((1, E), jnp.float32),
        'w1': jax.random.normal(ks[4], (E, F), jnp.float32) * s,
        'b1': jnp.zeros((1, F), jnp.float32),
        'w2': jax.random.normal(ks[5], (F, E), jnp.float32) * s,
        'b2': jnp.zeros((1, E), jnp.float32),
    }


def ref_forward(x, pos, qk_mask, k_mask, params, n_head,
                mxu_dtype=jnp.bfloat16):
    """Pure-JAX reference on (B, S, E) layout, mirroring the MXU precision."""
    B, S, E = x.shape
    H, Dh = n_head, E // n_head
    mx = jnp.dtype(mxu_dtype)
    f32 = jnp.float32

    def mm(a, w):
        return jnp.dot(a.astype(mx), w.astype(mx), preferred_element_type=f32)

    h = _layer_norm(x, params['ln1_g'], params['ln1_b'])
    hp = h + pos
    q = mm(hp, params['wq']) + params['bq']
    k = mm(hp, params['wk']) + params['bk']
    v = mm(h, params['wv']) + params['bv']
    qh = q.reshape(B, S, H, Dh).transpose(0, 2, 1, 3)
    kh = k.reshape(B, S, H, Dh).transpose(0, 2, 1, 3)
    vh = v.reshape(B, S, H, Dh).transpose(0, 2, 1, 3)
    sc = jnp.einsum('bhqd,bhkd->bhqk', qh.astype(mx), kh.astype(mx),
                    preferred_element_type=f32) * (1.0 / (Dh ** 0.5))
    sc = sc + qk_mask[:, None] + k_mask[:, None]
    p = jax.nn.softmax(sc, axis=-1)
    ctx = jnp.einsum('bhqk,bhkd->bhqd', p.astype(mx), vh.astype(mx),
                     preferred_element_type=f32)
    ctx = ctx.transpose(0, 2, 1, 3).reshape(B, S, E)
    x1 = x + mm(ctx, params['wo']) + params['bo']
    h2 = _layer_norm(x1, params['ln2_g'], params['ln2_b'])
    f = _gelu_tanh(mm(h2, params['w1']) + params['b1'])
    f = mm(f, params['w2']) + params['b2']
    return x1 + f


if __name__ == "__main__":
    B, S, E, F, H = 2, 8, 32, 64, 4   # batch, seq, embed_dim, ffn_dim, n_head

    key = jax.random.PRNGKey(0)
    k_x, k_pos, k_par = jax.random.split(key, 3)

    decoder_embed = jax.random.normal(k_x, (B, E, 1, S), jnp.float32)       # NCHW
    decoder_pos_embed = jax.random.normal(k_pos, (1, E, 1, S), jnp.float32) * 0.1

    causal = jnp.where(jnp.tril(jnp.ones((S, S), jnp.float32)) > 0, 0.0, -1e4)
    decoder_qk_mask = jnp.broadcast_to(causal, (B, S, S)).astype(jnp.float32)
    decoder_k_mask = jnp.zeros((B, 1, S), jnp.float32).at[1, 0, S - 1].set(-1e4)

    params = init_params(k_par, E, F)

    out = gpt_decoder_layer(decoder_embed, decoder_k_mask, decoder_qk_mask,
                            decoder_pos_embed, params, n_head=H)
    out = jax.block_until_ready(out)

    # verify against pure-JAX references
    x_bse = jnp.transpose(decoder_embed[:, :, 0, :], (0, 2, 1))
    pos_bse = jnp.transpose(decoder_pos_embed[:, :, 0, :], (0, 2, 1))

    ref_mx = ref_forward(x_bse, pos_bse, decoder_qk_mask, decoder_k_mask,
                         params, H, mxu_dtype=jnp.bfloat16)
    ref_mx = jnp.transpose(ref_mx, (0, 2, 1))[:, :, None, :]
    ref_fp = ref_forward(x_bse, pos_bse, decoder_qk_mask, decoder_k_mask,
                         params, H, mxu_dtype=jnp.float32)
    ref_fp = jnp.transpose(ref_fp, (0, 2, 1))[:, :, None, :]

    assert out.shape == (B, E, 1, S), out.shape
    # primary check: kernel vs mixed-precision (bf16 MXU, fp32 accum) reference;
    # tolerance also covers the EUP approximate-reciprocal softmax normalization.
    assert jnp.allclose(out, ref_mx, atol=5e-3, rtol=5e-3), \
        float(jnp.max(jnp.abs(out - ref_mx)))
    # sanity check vs full-fp32 semantics of the original module.
    assert jnp.allclose(out, ref_fp, atol=3e-2, rtol=3e-2), \
        float(jnp.max(jnp.abs(out - ref_fp)))
    print("KERNEL_OK")
</pallas_src>

<mosaic_0001>
module attributes {stable_mosaic.version = 11 : i64} {
  func.func @decoder_layer_kernel(%arg0: i32, %arg1: i32, %arg2: memref<1x8x32xf32, #tpu.memory_space<vmem>>, %arg3: memref<1x8x8xbf16, #tpu.memory_space<vmem>>, %arg4: memref<1x1x8xbf16, #tpu.memory_space<vmem>>, %arg5: memref<1x8x32xf32, #tpu.memory_space<vmem>>, %arg6: memref<1x32xf32, #tpu.memory_space<vmem>>, %arg7: memref<1x32xf32, #tpu.memory_space<vmem>>, %arg8: memref<32x32xbf16, #tpu.memory_space<vmem>>, %arg9: memref<1x32xf32, #tpu.memory_space<vmem>>, %arg10: memref<32x32xbf16, #tpu.memory_space<vmem>>, %arg11: memref<1x32xf32, #tpu.memory_space<vmem>>, %arg12: memref<32x32xbf16, #tpu.memory_space<vmem>>, %arg13: memref<1x32xf32, #tpu.memory_space<vmem>>, %arg14: memref<32x32xbf16, #tpu.memory_space<vmem>>, %arg15: memref<1x32xf32, #tpu.memory_space<vmem>>, %arg16: memref<1x32xf32, #tpu.memory_space<vmem>>, %arg17: memref<1x32xf32, #tpu.memory_space<vmem>>, %arg18: memref<32x64xbf16, #tpu.memory_space<vmem>>, %arg19: memref<1x64xf32, #tpu.memory_space<vmem>>, %arg20: memref<64x32xbf16, #tpu.memory_space<vmem>>, %arg21: memref<1x32xf32, #tpu.memory_space<vmem>>, %arg22: memref<1x8x32xf32, #tpu.memory_space<vmem>>, %arg23: memref<8x32xbf16, #tpu.memory_space<vmem>>, %arg24: memref<32x8xbf16, #tpu.memory_space<vmem>>, %arg25: memref<8x32xbf16, #tpu.memory_space<vmem>>, %arg26: memref<8x32xbf16, #tpu.memory_space<vmem>>) attributes {dimension_semantics = [#tpu.dimension_semantics<parallel>, #tpu.dimension_semantics<arbitrary>], iteration_bounds = array<i64: 2, 1>, scalar_prefetch = 0 : i64, scratch_operands = 4 : i64, tpu.core_type = #tpu.core_type<tc>, window_params = [{transform_indices = @transform_0, window_bounds = array<i64: 1, 8, 32>}, {transform_indices = @transform_1, window_bounds = array<i64: 1, 8, 8>}, {transform_indices = @transform_2, window_bounds = array<i64: 1, 1, 8>}, {pipeline_mode = #tpu.pipeline_mode<synchronous>, transform_indices = @transform_3, window_bounds = array<i64: 1, 8, 32>}, {pipeline_mode = #tpu.pipeline_mode<synchronous>, transform_indices = @transform_4, window_bounds = array<i64: 1, 32>}, {pipeline_mode = #tpu.pipeline_mode<synchronous>, transform_indices = @transform_5, window_bounds = array<i64: 1, 32>}, {pipeline_mode = #tpu.pipeline_mode<synchronous>, transform_indices = @transform_6, window_bounds = array<i64: 32, 32>}, {pipeline_mode = #tpu.pipeline_mode<synchronous>, transform_indices = @transform_7, window_bounds = array<i64: 1, 32>}, {pipeline_mode = #tpu.pipeline_mode<synchronous>, transform_indices = @transform_8, window_bounds = array<i64: 32, 32>}, {pipeline_mode = #tpu.pipeline_mode<synchronous>, transform_indices = @transform_9, window_bounds = array<i64: 1, 32>}, {pipeline_mode = #tpu.pipeline_mode<synchronous>, transform_indices = @transform_10, window_bounds = array<i64: 32, 32>}, {pipeline_mode = #tpu.pipeline_mode<synchronous>, transform_indices = @transform_11, window_bounds = array<i64: 1, 32>}, {pipeline_mode = #tpu.pipeline_mode<synchronous>, transform_indices = @transform_12, window_bounds = array<i64: 32, 32>}, {pipeline_mode = #tpu.pipeline_mode<synchronous>, transform_indices = @transform_13, window_bounds = array<i64: 1, 32>}, {pipeline_mode = #tpu.pipeline_mode<synchronous>, transform_indices = @transform_14, window_bounds = array<i64: 1, 32>}, {pipeline_mode = #tpu.pipeline_mode<synchronous>, transform_indices = @transform_15, window_bounds = array<i64: 1, 32>}, {pipeline_mode = #tpu.pipeline_mode<synchronous>, transform_indices = @transform_16, window_bounds = array<i64: 32, 64>}, {pipeline_mode = #tpu.pipeline_mode<synchronous>, transform_indices = @transform_17, window_bounds = array<i64: 1, 64>}, {pipeline_mode = #tpu.pipeline_mode<synchronous>, transform_indices = @transform_18, window_bounds = array<i64: 64, 32>}, {pipeline_mode = #tpu.pipeline_mode<synchronous>, transform_indices = @transform_19, window_bounds = array<i64: 1, 32>}, {transform_indices = @transform_20, window_bounds = array<i64: 1, 8, 32>}]} {
    %c0_i32 = arith.constant 0 : i32
    %0 = arith.cmpi eq, %arg1, %c0_i32 : i32
    %1 = arith.extui %0 : i1 to i32
    %c0_i32_0 = arith.constant 0 : i32
    %2 = arith.cmpi ne, %1, %c0_i32_0 : i32
    scf.if %2 {
      %c0_87 = arith.constant 0 : index
      %c0_88 = arith.constant 0 : index
      %c0_89 = arith.constant 0 : index
      %168 = vector.load %arg2[%c0_87, %c0_88, %c0_89] : memref<1x8x32xf32, #tpu.memory_space<vmem>>, vector<1x8x32xf32>
      %169 = vector.shape_cast %168 : vector<1x8x32xf32> to vector<8x32xf32>
      %c0_90 = arith.constant 0 : index
      %c0_91 = arith.constant 0 : index
      %170 = vector.load %arg6[%c0_90, %c0_91] : memref<1x32xf32, #tpu.memory_space<vmem>>, vector<1x32xf32>
      %c0_92 = arith.constant 0 : index
      %c0_93 = arith.constant 0 : index
      %171 = vector.load %arg7[%c0_92, %c0_93] : memref<1x32xf32, #tpu.memory_space<vmem>>, vector<1x32xf32>
      %cst_94 = arith.constant dense<0.000000e+00> : vector<8xf32>
      %172 = vector.multi_reduction <add>, %169, %cst_94 [1] : vector<8x32xf32> to vector<8xf32>
      %173 = vector.shape_cast %172 : vector<8xf32> to vector<8x1xf32>
      %cst_95 = arith.constant 3.200000e+01 : f32
      %174 = vector.broadcast %cst_95 : f32 to vector<8x1xf32>
      %175 = arith.divf %173, %174 : vector<8x1xf32>
      %176 = vector.broadcast %175 : vector<8x1xf32> to vector<8x32xf32>
      %177 = arith.subf %169, %176 : vector<8x32xf32>
      %178 = arith.mulf %177, %177 : vector<8x32xf32>
      %cst_96 = arith.constant dense<0.000000e+00> : vector<8xf32>
      %179 = vector.multi_reduction <add>, %178, %cst_96 [1] : vector<8x32xf32> to vector<8xf32>
      %180 = vector.shape_cast %179 : vector<8xf32> to vector<8x1xf32>
      %cst_97 = arith.constant 3.200000e+01 : f32
      %181 = vector.broadcast %cst_97 : f32 to vector<8x1xf32>
      %182 = arith.divf %180, %181 : vector<8x1xf32>
      %183 = vector.broadcast %175 : vector<8x1xf32> to vector<8x32xf32>
      %184 = arith.subf %169, %183 : vector<8x32xf32>
      %cst_98 = arith.constant 9.99999974E-6 : f32
      %185 = vector.broadcast %cst_98 : f32 to vector<8x1xf32>
      %186 = arith.addf %182, %185 : vector<8x1xf32>
      %187 = math.rsqrt %186 : vector<8x1xf32>
      %188 = vector.broadcast %187 : vector<8x1xf32> to vector<8x32xf32>
      %189 = arith.mulf %184, %188 : vector<8x32xf32>
      %190 = vector.broadcast %170 : vector<1x32xf32> to vector<8x32xf32>
      %191 = arith.mulf %189, %190 : vector<8x32xf32>
      %192 = vector.broadcast %171 : vector<1x32xf32> to vector<8x32xf32>
      %193 = arith.addf %191, %192 : vector<8x32xf32>
      %c0_99 = arith.constant 0 : index
      %c0_100 = arith.constant 0 : index
      %c0_101 = arith.constant 0 : index
      %194 = vector.load %arg5[%c0_99, %c0_100, %c0_101] : memref<1x8x32xf32, #tpu.memory_space<vmem>>, vector<1x8x32xf32>
      %195 = vector.shape_cast %194 : vector<1x8x32xf32> to vector<8x32xf32>
      %196 = arith.addf %193, %195 : vector<8x32xf32>
      %197 = arith.truncf %196 : vector<8x32xf32> to vector<8x32xbf16>
      %c0_102 = arith.constant 0 : index
      %c0_103 = arith.constant 0 : index
      %198 = vector.load %arg23[%c0_102, %c0_103] : memref<8x32xbf16, #tpu.memory_space<vmem>>, vector<8x32xbf16>
      tpu.vector_store %arg23[%c0_102, %c0_103], %197 {strides = array<i32>} : memref<8x32xbf16, #tpu.memory_space<vmem>>, vector<8x32xbf16>,
      %c0_104 = arith.constant 0 : index
      %c0_105 = arith.constant 0 : index
      %199 = vector.load %arg10[%c0_104, %c0_105] : memref<32x32xbf16, #tpu.memory_space<vmem>>, vector<32x32xbf16>
      %cst_106 = arith.constant dense<0.000000e+00> : vector<8x32xf32>
      %200 = tpu.matmul %197, %199, %cst_106 {dimension_numbers = #tpu.dot_dimension_numbers<[1], [0], [0], [1], [0, 0, 1, 1], [], []>} : vector<8x32xbf16>, vector<32x32xbf16>, vector<8x32xf32> -> vector<8x32xf32>
      %c0_107 = arith.constant 0 : index
      %c0_108 = arith.constant 0 : index
      %201 = vector.load %arg11[%c0_107, %c0_108] : memref<1x32xf32, #tpu.memory_space<vmem>>, vector<1x32xf32>
      %202 = vector.broadcast %201 : vector<1x32xf32> to vector<8x32xf32>
      %203 = arith.addf %200, %202 : vector<8x32xf32>
      %204 = arith.truncf %203 : vector<8x32xf32> to vector<8x32xbf16>
      %205 = tpu.transpose %204, [1, 0] : vector<8x32xbf16> -> vector<32x8xbf16>
      %c0_109 = arith.constant 0 : index
      %c0_110 = arith.constant 0 : index
      %206 = vector.load %arg24[%c0_109, %c0_110] : memref<32x8xbf16, #tpu.memory_space<vmem>>, vector<32x8xbf16>
      tpu.vector_store %arg24[%c0_109, %c0_110], %205 {strides = array<i32>} : memref<32x8xbf16, #tpu.memory_space<vmem>>, vector<32x8xbf16>,
      %207 = arith.truncf %193 : vector<8x32xf32> to vector<8x32xbf16>
      %c0_111 = arith.constant 0 : index
      %c0_112 = arith.constant 0 : index
      %208 = vector.load %arg12[%c0_111, %c0_112] : memref<32x32xbf16, #tpu.memory_space<vmem>>, vector<32x32xbf16>
      %cst_113 = arith.constant dense<0.000000e+00> : vector<8x32xf32>
      %209 = tpu.matmul %207, %208, %cst_113 {dimension_numbers = #tpu.dot_dimension_numbers<[1], [0], [0], [1], [0, 0, 1, 1], [], []>} : vector<8x32xbf16>, vector<32x32xbf16>, vector<8x32xf32> -> vector<8x32xf32>
      %c0_114 = arith.constant 0 : index
      %c0_115 = arith.constant 0 : index
      %210 = vector.load %arg13[%c0_114, %c0_115] : memref<1x32xf32, #tpu.memory_space<vmem>>, vector<1x32xf32>
      %211 = vector.broadcast %210 : vector<1x32xf32> to vector<8x32xf32>
      %212 = arith.addf %209, %211 : vector<8x32xf32>
      %213 = arith.truncf %212 : vector<8x32xf32> to vector<8x32xbf16>
      %c0_116 = arith.constant 0 : index
      %c0_117 = arith.constant 0 : index
      %214 = vector.load %arg25[%c0_116, %c0_117] : memref<8x32xbf16, #tpu.memory_space<vmem>>, vector<8x32xbf16>
      tpu.vector_store %arg25[%c0_116, %c0_117], %213 {strides = array<i32>} : memref<8x32xbf16, #tpu.memory_space<vmem>>, vector<8x32xbf16>,
    } else {
    }
    %c8_i32 = arith.constant 8 : i32
    %3 = arith.muli %arg1, %c8_i32 : i32
    %4 = tpu.assume_multiple %3, 8 : i32
    %c0 = arith.constant 0 : index
    %5 = arith.index_cast %4 : i32 to index
    %c0_1 = arith.constant 0 : index
    %6 = vector.load %arg2[%c0, %5, %c0_1] : memref<1x8x32xf32, #tpu.memory_space<vmem>>, vector<1x8x32xf32>
    %7 = vector.shape_cast %6 : vector<1x8x32xf32> to vector<8x32xf32>
    %8 = arith.index_cast %4 : i32 to index
    %c0_2 = arith.constant 0 : index
    %9 = vector.load %arg23[%8, %c0_2] : memref<8x32xbf16, #tpu.memory_space<vmem>>, vector<8x32xbf16>
    %c0_3 = arith.constant 0 : index
    %c0_4 = arith.constant 0 : index
    %10 = vector.load %arg8[%c0_3, %c0_4] : memref<32x32xbf16, #tpu.memory_space<vmem>>, vector<32x32xbf16>
    %cst = arith.constant dense<0.000000e+00> : vector<8x32xf32>
    %11 = tpu.matmul %9, %10, %cst {dimension_numbers = #tpu.dot_dimension_numbers<[1], [0], [0], [1], [0, 0, 1, 1], [], []>} : vector<8x32xbf16>, vector<32x32xbf16>, vector<8x32xf32> -> vector<8x32xf32>
    %c0_5 = arith.constant 0 : index
    %c0_6 = arith.constant 0 : index
    %12 = vector.load %arg9[%c0_5, %c0_6] : memref<1x32xf32, #tpu.memory_space<vmem>>, vector<1x32xf32>
    %13 = vector.broadcast %12 : vector<1x32xf32> to vector<8x32xf32>
    %14 = arith.addf %11, %13 : vector<8x32xf32>
    %15 = arith.truncf %14 : vector<8x32xf32> to vector<8x32xbf16>
    %c0_7 = arith.constant 0 : index
    %c0_8 = arith.constant 0 : index
    %c0_9 = arith.constant 0 : index
    %16 = vector.load %arg3[%c0_7, %c0_8, %c0_9] : memref<1x8x8xbf16, #tpu.memory_space<vmem>>, vector<1x8x8xbf16>
    %17 = vector.shape_cast %16 : vector<1x8x8xbf16> to vector<8x8xbf16>
    %18 = arith.extf %17 : vector<8x8xbf16> to vector<8x8xf32>
    %c0_10 = arith.constant 0 : index
    %c0_11 = arith.constant 0 : index
    %c0_12 = arith.constant 0 : index
    %19 = vector.load %arg4[%c0_10, %c0_11, %c0_12] : memref<1x1x8xbf16, #tpu.memory_space<vmem>>, vector<1x1x8xbf16>
    %20 = vector.shape_cast %19 : vector<1x1x8xbf16> to vector<1x8xbf16>
    %21 = arith.extf %20 : vector<1x8xbf16> to vector<1x8xf32>
    %22 = vector.broadcast %21 : vector<1x8xf32> to vector<8x8xf32>
    %23 = arith.addf %18, %22 : vector<8x8xf32>
    %24 = vector.extract_strided_slice %15 {offsets = [0, 0], sizes = [8, 8], strides = [1, 1]} : vector<8x32xbf16> to vector<8x8xbf16>
    %c0_13 = arith.constant 0 : index
    %c0_14 = arith.constant 0 : index
    %25 = vector.load %arg24[%c0_13, %c0_14] : memref<32x8xbf16, #tpu.memory_space<vmem>>, vector<8x8xbf16>
    %c0_15 = arith.constant 0 : index
    %c0_16 = arith.constant 0 : index
    %26 = vector.load %arg25[%c0_15, %c0_16] : memref<8x32xbf16, #tpu.memory_space<vmem>>, vector<8x8xbf16>
    %cst_17 = arith.constant dense<0.000000e+00> : vector<8x8xf32>
    %27 = tpu.matmul %24, %25, %cst_17 {dimension_numbers = #tpu.dot_dimension_numbers<[1], [0], [0], [1], [0, 0, 1, 1], [], []>} : vector<8x8xbf16>, vector<8x8xbf16>, vector<8x8xf32> -> vector<8x8xf32>
    %cst_18 = arith.constant 0.353553385 : f32
    %28 = vector.broadcast %cst_18 : f32 to vector<8x8xf32>
    %29 = arith.mulf %27, %28 : vector<8x8xf32>
    %30 = arith.addf %29, %23 : vector<8x8xf32>
    %cst_19 = arith.constant dense<0xFF800000> : vector<8xf32>
    %31 = vector.multi_reduction <maximumf>, %30, %cst_19 [1] : vector<8x8xf32> to vector<8xf32>
    %32 = vector.shape_cast %31 : vector<8xf32> to vector<8x1xf32>
    %33 = vector.broadcast %32 : vector<8x1xf32> to vector<8x8xf32>
    %34 = arith.subf %30, %33 : vector<8x8xf32>
    %35 = math.exp %34 : vector<8x8xf32>
    %cst_20 = arith.constant dense<0.000000e+00> : vector<8xf32>
    %36 = vector.multi_reduction <add>, %35, %cst_20 [1] : vector<8x8xf32> to vector<8xf32>
    %37 = vector.shape_cast %36 : vector<8xf32> to vector<8x1xf32>
    %38 = tpu.reciprocal %37 {approx = true} : vector<8x1xf32> -> vector<8x1xf32>
    %39 = vector.broadcast %38 : vector<8x1xf32> to vector<8x8xf32>
    %40 = arith.mulf %35, %39 : vector<8x8xf32>
    %41 = arith.truncf %40 : vector<8x8xf32> to vector<8x8xbf16>
    %cst_21 = arith.constant dense<0.000000e+00> : vector<8x8xf32>
    %42 = tpu.matmul %41, %26, %cst_21 {dimension_numbers = #tpu.dot_dimension_numbers<[1], [0], [0], [1], [0, 0, 1, 1], [], []>} : vector<8x8xbf16>, vector<8x8xbf16>, vector<8x8xf32> -> vector<8x8xf32>
    %43 = arith.truncf %42 : vector<8x8xf32> to vector<8x8xbf16>
    %c0_22 = arith.constant 0 : index
    %c0_23 = arith.constant 0 : index
    %44 = vector.load %arg26[%c0_22, %c0_23] : memref<8x32xbf16, #tpu.memory_space<vmem>>, vector<8x8xbf16>
    tpu.vector_store %arg26[%c0_22, %c0_23], %43 {strides = array<i32>} : memref<8x32xbf16, #tpu.memory_space<vmem>>, vector<8x8xbf16>,
    %45 = vector.extract_strided_slice %15 {offsets = [0, 8], sizes = [8, 8], strides = [1, 1]} : vector<8x32xbf16> to vector<8x8xbf16>
    %c8 = arith.constant 8 : index
    %c0_24 = arith.constant 0 : index
    %46 = vector.load %arg24[%c8, %c0_24] : memref<32x8xbf16, #tpu.memory_space<vmem>>, vector<8x8xbf16>
    %c0_25 = arith.constant 0 : index
    %c8_26 = arith.constant 8 : index
    %47 = vector.load %arg25[%c0_25, %c8_26] : memref<8x32xbf16, #tpu.memory_space<vmem>>, vector<8x8xbf16>
    %cst_27 = arith.constant dense<0.000000e+00> : vector<8x8xf32>
    %48 = tpu.matmul %45, %46, %cst_27 {dimension_numbers = #tpu.dot_dimension_numbers<[1], [0], [0], [1], [0, 0, 1, 1], [], []>} : vector<8x8xbf16>, vector<8x8xbf16>, vector<8x8xf32> -> vector<8x8xf32>
    %cst_28 = arith.constant 0.353553385 : f32
    %49 = vector.broadcast %cst_28 : f32 to vector<8x8xf32>
    %50 = arith.mulf %48, %49 : vector<8x8xf32>
    %51 = arith.addf %50, %23 : vector<8x8xf32>
    %cst_29 = arith.constant dense<0xFF800000> : vector<8xf32>
    %52 = vector.multi_reduction <maximumf>, %51, %cst_29 [1] : vector<8x8xf32> to vector<8xf32>
    %53 = vector.shape_cast %52 : vector<8xf32> to vector<8x1xf32>
    %54 = vector.broadcast %53 : vector<8x1xf32> to vector<8x8xf32>
    %55 = arith.subf %51, %54 : vector<8x8xf32>
    %56 = math.exp %55 : vector<8x8xf32>
    %cst_30 = arith.constant dense<0.000000e+00> : vector<8xf32>
    %57 = vector.multi_reduction <add>, %56, %cst_30 [1] : vector<8x8xf32> to vector<8xf32>
    %58 = vector.shape_cast %57 : vector<8xf32> to vector<8x1xf32>
    %59 = tpu.reciprocal %58 {approx = true} : vector<8x1xf32> -> vector<8x1xf32>
    %60 = vector.broadcast %59 : vector<8x1xf32> to vector<8x8xf32>
    %61 = arith.mulf %56, %60 : vector<8x8xf32>
    %62 = arith.truncf %61 : vector<8x8xf32> to vector<8x8xbf16>
    %cst_31 = arith.constant dense<0.000000e+00> : vector<8x8xf32>
    %63 = tpu.matmul %62, %47, %cst_31 {dimension_numbers = #tpu.dot_dimension_numbers<[1], [0], [0], [1], [0, 0, 1, 1], [], []>} : vector<8x8xbf16>, vector<8x8xbf16>, vector<8x8xf32> -> vector<8x8xf32>
    %64 = arith.truncf %63 : vector<8x8xf32> to vector<8x8xbf16>
    %c0_32 = arith.constant 0 : index
    %c8_33 = arith.constant 8 : index
    %65 = vector.load %arg26[%c0_32, %c8_33] : memref<8x32xbf16, #tpu.memory_space<vmem>>, vector<8x8xbf16>
    tpu.vector_store %arg26[%c0_32, %c8_33], %64 {strides = array<i32>} : memref<8x32xbf16, #tpu.memory_space<vmem>>, vector<8x8xbf16>,
    %66 = vector.extract_strided_slice %15 {offsets = [0, 16], sizes = [8, 8], strides = [1, 1]} : vector<8x32xbf16> to vector<8x8xbf16>
    %c16 = arith.constant 16 : index
    %c0_34 = arith.constant 0 : index
    %67 = vector.load %arg24[%c16, %c0_34] : memref<32x8xbf16, #tpu.memory_space<vmem>>, vector<8x8xbf16>
    %c0_35 = arith.constant 0 : index
    %c16_36 = arith.constant 16 : index
    %68 = vector.load %arg25[%c0_35, %c16_36] : memref<8x32xbf16, #tpu.memory_space<vmem>>, vector<8x8xbf16>
    %cst_37 = arith.constant dense<0.000000e+00> : vector<8x8xf32>
    %69 = tpu.matmul %66, %67, %cst_37 {dimension_numbers = #tpu.dot_dimension_numbers<[1], [0], [0], [1], [0, 0, 1, 1], [], []>} : vector<8x8xbf16>, vector<8x8xbf16>, vector<8x8xf32> -> vector<8x8xf32>
    %cst_38 = arith.constant 0.353553385 : f32
    %70 = vector.broadcast %cst_38 : f32 to vector<8x8xf32>
    %71 = arith.mulf %69, %70 : vector<8x8xf32>
    %72 = arith.addf %71, %23 : vector<8x8xf32>
    %cst_39 = arith.constant dense<0xFF800000> : vector<8xf32>
    %73 = vector.multi_reduction <maximumf>, %72, %cst_39 [1] : vector<8x8xf32> to vector<8xf32>
    %74 = vector.shape_cast %73 : vector<8xf32> to vector<8x1xf32>
    %75 = vector.broadcast %74 : vector<8x1xf32> to vector<8x8xf32>
    %76 = arith.subf %72, %75 : vector<8x8xf32>
    %77 = math.exp %76 : vector<8x8xf32>
    %cst_40 = arith.constant dense<0.000000e+00> : vector<8xf32>
    %78 = vector.multi_reduction <add>, %77, %cst_40 [1] : vector<8x8xf32> to vector<8xf32>
    %79 = vector.shape_cast %78 : vector<8xf32> to vector<8x1xf32>
    %80 = tpu.reciprocal %79 {approx = true} : vector<8x1xf32> -> vector<8x1xf32>
    %81 = vector.broadcast %80 : vector<8x1xf32> to vector<8x8xf32>
    %82 = arith.mulf %77, %81 : vector<8x8xf32>
    %83 = arith.truncf %82 : vector<8x8xf32> to vector<8x8xbf16>
    %cst_41 = arith.constant dense<0.000000e+00> : vector<8x8xf32>
    %84 = tpu.matmul %83, %68, %cst_41 {dimension_numbers = #tpu.dot_dimension_numbers<[1], [0], [0], [1], [0, 0, 1, 1], [], []>} : vector<8x8xbf16>, vector<8x8xbf16>, vector<8x8xf32> -> vector<8x8xf32>
    %85 = arith.truncf %84 : vector<8x8xf32> to vector<8x8xbf16>
    %c0_42 = arith.constant 0 : index
    %c16_43 = arith.constant 16 : index
    %86 = vector.load %arg26[%c0_42, %c16_43] : memref<8x32xbf16, #tpu.memory_space<vmem>>, vector<8x8xbf16>
    tpu.vector_store %arg26[%c0_42, %c16_43], %85 {strides = array<i32>} : memref<8x32xbf16, #tpu.memory_space<vmem>>, vector<8x8xbf16>,
    %87 = vector.extract_strided_slice %15 {offsets = [0, 24], sizes = [8, 8], strides = [1, 1]} : vector<8x32xbf16> to vector<8x8xbf16>
    %c24 = arith.constant 24 : index
    %c0_44 = arith.constant 0 : index
    %88 = vector.load %arg24[%c24, %c0_44] : memref<32x8xbf16, #tpu.memory_space<vmem>>, vector<8x8xbf16>
    %c0_45 = arith.constant 0 : index
    %c24_46 = arith.constant 24 : index
    %89 = vector.load %arg25[%c0_45, %c24_46] : memref<8x32xbf16, #tpu.memory_space<vmem>>, vector<8x8xbf16>
    %cst_47 = arith.constant dense<0.000000e+00> : vector<8x8xf32>
    %90 = tpu.matmul %87, %88, %cst_47 {dimension_numbers = #tpu.dot_dimension_numbers<[1], [0], [0], [1], [0, 0, 1, 1], [], []>} : vector<8x8xbf16>, vector<8x8xbf16>, vector<8x8xf32> -> vector<8x8xf32>
    %cst_48 = arith.constant 0.353553385 : f32
    %91 = vector.broadcast %cst_48 : f32 to vector<8x8xf32>
    %92 = arith.mulf %90, %91 : vector<8x8xf32>
    %93 = arith.addf %92, %23 : vector<8x8xf32>
    %cst_49 = arith.constant dense<0xFF800000> : vector<8xf32>
    %94 = vector.multi_reduction <maximumf>, %93, %cst_49 [1] : vector<8x8xf32> to vector<8xf32>
    %95 = vector.shape_cast %94 : vector<8xf32> to vector<8x1xf32>
    %96 = vector.broadcast %95 : vector<8x1xf32> to vector<8x8xf32>
    %97 = arith.subf %93, %96 : vector<8x8xf32>
    %98 = math.exp %97 : vector<8x8xf32>
    %cst_50 = arith.constant dense<0.000000e+00> : vector<8xf32>
    %99 = vector.multi_reduction <add>, %98, %cst_50 [1] : vector<8x8xf32> to vector<8xf32>
    %100 = vector.shape_cast %99 : vector<8xf32> to vector<8x1xf32>
    %101 = tpu.reciprocal %100 {approx = true} : vector<8x1xf32> -> vector<8x1xf32>
    %102 = vector.broadcast %101 : vector<8x1xf32> to vector<8x8xf32>
    %103 = arith.mulf %98, %102 : vector<8x8xf32>
    %104 = arith.truncf %103 : vector<8x8xf32> to vector<8x8xbf16>
    %cst_51 = arith.constant dense<0.000000e+00> : vector<8x8xf32>
    %105 = tpu.matmul %104, %89, %cst_51 {dimension_numbers = #tpu.dot_dimension_numbers<[1], [0], [0], [1], [0, 0, 1, 1], [], []>} : vector<8x8xbf16>, vector<8x8xbf16>, vector<8x8xf32> -> vector<8x8xf32>
    %106 = arith.truncf %105 : vector<8x8xf32> to vector<8x8xbf16>
    %c0_52 = arith.constant 0 : index
    %c24_53 = arith.constant 24 : index
    %107 = vector.load %arg26[%c0_52, %c24_53] : memref<8x32xbf16, #tpu.memory_space<vmem>>, vector<8x8xbf16>
    tpu.vector_store %arg26[%c0_52, %c24_53], %106 {strides = array<i32>} : memref<8x32xbf16, #tpu.memory_space<vmem>>, vector<8x8xbf16>,
    %c0_54 = arith.constant 0 : index
    %c0_55 = arith.constant 0 : index
    %108 = vector.load %arg26[%c0_54, %c0_55] : memref<8x32xbf16, #tpu.memory_space<vmem>>, vector<8x32xbf16>
    %c0_56 = arith.constant 0 : index
    %c0_57 = arith.constant 0 : index
    %109 = vector.load %arg14[%c0_56, %c0_57] : memref<32x32xbf16, #tpu.memory_space<vmem>>, vector<32x32xbf16>
    %cst_58 = arith.constant dense<0.000000e+00> : vector<8x32xf32>
    %110 = tpu.matmul %108, %109, %cst_58 {dimension_numbers = #tpu.dot_dimension_numbers<[1], [0], [0], [1], [0, 0, 1, 1], [], []>} : vector<8x32xbf16>, vector<32x32xbf16>, vector<8x32xf32> -> vector<8x32xf32>
    %c0_59 = arith.constant 0 : index
    %c0_60 = arith.constant 0 : index
    %111 = vector.load %arg15[%c0_59, %c0_60] : memref<1x32xf32, #tpu.memory_space<vmem>>, vector<1x32xf32>
    %112 = vector.broadcast %111 : vector<1x32xf32> to vector<8x32xf32>
    %113 = arith.addf %110, %112 : vector<8x32xf32>
    %114 = arith.addf %7, %113 : vector<8x32xf32>
    %c0_61 = arith.constant 0 : index
    %c0_62 = arith.constant 0 : index
    %115 = vector.load %arg16[%c0_61, %c0_62] : memref<1x32xf32, #tpu.memory_space<vmem>>, vector<1x32xf32>
    %c0_63 = arith.constant 0 : index
    %c0_64 = arith.constant 0 : index
    %116 = vector.load %arg17[%c0_63, %c0_64] : memref<1x32xf32, #tpu.memory_space<vmem>>, vector<1x32xf32>
    %cst_65 = arith.constant dense<0.000000e+00> : vector<8xf32>
    %117 = vector.multi_reduction <add>, %114, %cst_65 [1] : vector<8x32xf32> to vector<8xf32>
    %118 = vector.shape_cast %117 : vector<8xf32> to vector<8x1xf32>
    %cst_66 = arith.constant 3.200000e+01 : f32
    %119 = vector.broadcast %cst_66 : f32 to vector<8x1xf32>
    %120 = arith.divf %118, %119 : vector<8x1xf32>
    %121 = vector.broadcast %120 : vector<8x1xf32> to vector<8x32xf32>
    %122 = arith.subf %114, %121 : vector<8x32xf32>
    %123 = arith.mulf %122, %122 : vector<8x32xf32>
    %cst_67 = arith.constant dense<0.000000e+00> : vector<8xf32>
    %124 = vector.multi_reduction <add>, %123, %cst_67 [1] : vector<8x32xf32> to vector<8xf32>
    %125 = vector.shape_cast %124 : vector<8xf32> to vector<8x1xf32>
    %cst_68 = arith.constant 3.200000e+01 : f32
    %126 = vector.broadcast %cst_68 : f32 to vector<8x1xf32>
    %127 = arith.divf %125, %126 : vector<8x1xf32>
    %128 = vector.broadcast %120 : vector<8x1xf32> to vector<8x32xf32>
    %129 = arith.subf %114, %128 : vector<8x32xf32>
    %cst_69 = arith.constant 9.99999974E-6 : f32
    %130 = vector.broadcast %cst_69 : f32 to vector<8x1xf32>
    %131 = arith.addf %127, %130 : vector<8x1xf32>
    %132 = math.rsqrt %131 : vector<8x1xf32>
    %133 = vector.broadcast %132 : vector<8x1xf32> to vector<8x32xf32>
    %134 = arith.mulf %129, %133 : vector<8x32xf32>
    %135 = vector.broadcast %115 : vector<1x32xf32> to vector<8x32xf32>
    %136 = arith.mulf %134, %135 : vector<8x32xf32>
    %137 = vector.broadcast %116 : vector<1x32xf32> to vector<8x32xf32>
    %138 = arith.addf %136, %137 : vector<8x32xf32>
    %139 = arith.truncf %138 : vector<8x32xf32> to vector<8x32xbf16>
    %c0_70 = arith.constant 0 : index
    %c0_71 = arith.constant 0 : index
    %140 = vector.load %arg18[%c0_70, %c0_71] : memref<32x64xbf16, #tpu.memory_space<vmem>>, vector<32x64xbf16>
    %cst_72 = arith.constant dense<0.000000e+00> : vector<8x64xf32>
    %141 = tpu.matmul %139, %140, %cst_72 {dimension_numbers = #tpu.dot_dimension_numbers<[1], [0], [0], [1], [0, 0, 1, 1], [], []>} : vector<8x32xbf16>, vector<32x64xbf16>, vector<8x64xf32> -> vector<8x64xf32>
    %c0_73 = arith.constant 0 : index
    %c0_74 = arith.constant 0 : index
    %142 = vector.load %arg19[%c0_73, %c0_74] : memref<1x64xf32, #tpu.memory_space<vmem>>, vector<1x64xf32>
    %143 = vector.broadcast %142 : vector<1x64xf32> to vector<8x64xf32>
    %144 = arith.addf %141, %143 : vector<8x64xf32>
    %cst_75 = arith.constant 5.000000e-01 : f32
    %145 = vector.broadcast %cst_75 : f32 to vector<8x64xf32>
    %146 = arith.mulf %145, %144 : vector<8x64xf32>
    %cst_76 = arith.constant 4.471500e-02 : f32
    %147 = vector.broadcast %cst_76 : f32 to vector<8x64xf32>
    %148 = arith.mulf %147, %144 : vector<8x64xf32>
    %149 = arith.mulf %148, %144 : vector<8x64xf32>
    %150 = arith.mulf %149, %144 : vector<8x64xf32>
    %151 = arith.addf %144, %150 : vector<8x64xf32>
    %cst_77 = arith.constant 0.797884583 : f32
    %152 = vector.broadcast %cst_77 : f32 to vector<8x64xf32>
    %153 = arith.mulf %152, %151 : vector<8x64xf32>
    %154 = math.tanh %153 : vector<8x64xf32>
    %cst_78 = arith.constant 1.000000e+00 : f32
    %155 = vector.broadcast %cst_78 : f32 to vector<8x64xf32>
    %156 = arith.addf %155, %154 : vector<8x64xf32>
    %157 = arith.mulf %146, %156 : vector<8x64xf32>
    %158 = arith.truncf %157 : vector<8x64xf32> to vector<8x64xbf16>
    %c0_79 = arith.constant 0 : index
    %c0_80 = arith.constant 0 : index
    %159 = vector.load %arg20[%c0_79, %c0_80] : memref<64x32xbf16, #tpu.memory_space<vmem>>, vector<64x32xbf16>
    %cst_81 = arith.constant dense<0.000000e+00> : vector<8x32xf32>
    %160 = tpu.matmul %158, %159, %cst_81 {dimension_numbers = #tpu.dot_dimension_numbers<[1], [0], [0], [1], [0, 0, 1, 1], [], []>} : vector<8x64xbf16>, vector<64x32xbf16>, vector<8x32xf32> -> vector<8x32xf32>
    %c0_82 = arith.constant 0 : index
    %c0_83 = arith.constant 0 : index
    %161 = vector.load %arg21[%c0_82, %c0_83] : memref<1x32xf32, #tpu.memory_space<vmem>>, vector<1x32xf32>
    %162 = vector.broadcast %161 : vector<1x32xf32> to vector<8x32xf32>
    %163 = arith.addf %160, %162 : vector<8x32xf32>
    %164 = arith.addf %114, %163 : vector<8x32xf32>
    %c0_84 = arith.constant 0 : index
    %c0_85 = arith.constant 0 : index
    %c0_86 = arith.constant 0 : index
    %165 = vector.load %arg22[%c0_84, %c0_85, %c0_86] : memref<1x8x32xf32, #tpu.memory_space<vmem>>, vector<1x8x32xf32>
    %166 = vector.shape_cast %165 : vector<1x8x32xf32> to vector<8x32xf32>
    %167 = vector.shape_cast %164 : vector<8x32xf32> to vector<1x8x32xf32>
    tpu.vector_store %arg22[%c0_84, %c0_85, %c0_86], %167 {strides = array<i32>} : memref<1x8x32xf32, #tpu.memory_space<vmem>>, vector<1x8x32xf32>,
    return
  }
  func.func @transform_0(%arg0: i32, %arg1: i32) -> (i32, i32, i32) {
    %c0_i32 = arith.constant 0 : i32
    %c0_i32_0 = arith.constant 0 : i32
    %c0_i32_1 = arith.constant 0 : i32
    return %arg0, %c0_i32, %c0_i32_0 : i32, i32, i32
  }
  func.func @transform_1(%arg0: i32, %arg1: i32) -> (i32, i32, i32) {
    %c0_i32 = arith.constant 0 : i32
    %c0_i32_0 = arith.constant 0 : i32
    return %arg0, %arg1, %c0_i32 : i32, i32, i32
  }
  func.func @transform_2(%arg0: i32, %arg1: i32) -> (i32, i32, i32) {
    %c0_i32 = arith.constant 0 : i32
    %c0_i32_0 = arith.constant 0 : i32
    %c0_i32_1 = arith.constant 0 : i32
    return %arg0, %c0_i32, %c0_i32_0 : i32, i32, i32
  }
  func.func @transform_3(%arg0: i32, %arg1: i32) -> (i32, i32, i32) {
    %c0_i32 = arith.constant 0 : i32
    %c0_i32_0 = arith.constant 0 : i32
    %c0_i32_1 = arith.constant 0 : i32
    %c0_i32_2 = arith.constant 0 : i32
    return %c0_i32, %c0_i32_0, %c0_i32_1 : i32, i32, i32
  }
  func.func @transform_4(%arg0: i32, %arg1: i32) -> (i32, i32) {
    %c0_i32 = arith.constant 0 : i32
    %c0_i32_0 = arith.constant 0 : i32
    %c0_i32_1 = arith.constant 0 : i32
    return %c0_i32, %c0_i32_0 : i32, i32
  }
  func.func @transform_5(%arg0: i32, %arg1: i32) -> (i32, i32) {
    %c0_i32 = arith.constant 0 : i32
    %c0_i32_0 = arith.constant 0 : i32
    %c0_i32_1 = arith.constant 0 : i32
    return %c0_i32, %c0_i32_0 : i32, i32
  }
  func.func @transform_6(%arg0: i32, %arg1: i32) -> (i32, i32) {
    %c0_i32 = arith.constant 0 : i32
    %c0_i32_0 = arith.constant 0 : i32
    %c0_i32_1 = arith.constant 0 : i32
    return %c0_i32, %c0_i32_0 : i32, i32
  }
  func.func @transform_7(%arg0: i32, %arg1: i32) -> (i32, i32) {
    %c0_i32 = arith.constant 0 : i32
    %c0_i32_0 = arith.constant 0 : i32
    %c0_i32_1 = arith.constant 0 : i32
    return %c0_i32, %c0_i32_0 : i32, i32
  }
  func.func @transform_8(%arg0: i32, %arg1: i32) -> (i32, i32) {
    %c0_i32 = arith.constant 0 : i32
    %c0_i32_0 = arith.constant 0 : i32
    %c0_i32_1 = arith.constant 0 : i32
    return %c0_i32, %c0_i32_0 : i32, i32
  }
  func.func @transform_9(%arg0: i32, %arg1: i32) -> (i32, i32) {
    %c0_i32 = arith.constant 0 : i32
    %c0_i32_0 = arith.constant 0 : i32
    %c0_i32_1 = arith.constant 0 : i32
    return %c0_i32, %c0_i32_0 : i32, i32
  }
  func.func @transform_10(%arg0: i32, %arg1: i32) -> (i32, i32) {
    %c0_i32 = arith.constant 0 : i32
    %c0_i32_0 = arith.constant 0 : i32
    %c0_i32_1 = arith.constant 0 : i32
    return %c0_i32, %c0_i32_0 : i32, i32
  }
  func.func @transform_11(%arg0: i32, %arg1: i32) -> (i32, i32) {
    %c0_i32 = arith.constant 0 : i32
    %c0_i32_0 = arith.constant 0 : i32
    %c0_i32_1 = arith.constant 0 : i32
    return %c0_i32, %c0_i32_0 : i32, i32
  }
  func.func @transform_12(%arg0: i32, %arg1: i32) -> (i32, i32) {
    %c0_i32 = arith.constant 0 : i32
    %c0_i32_0 = arith.constant 0 : i32
    %c0_i32_1 = arith.constant 0 : i32
    return %c0_i32, %c0_i32_0 : i32, i32
  }
  func.func @transform_13(%arg0: i32, %arg1: i32) -> (i32, i32) {
    %c0_i32 = arith.constant 0 : i32
    %c0_i32_0 = arith.constant 0 : i32
    %c0_i32_1 = arith.constant 0 : i32
    return %c0_i32, %c0_i32_0 : i32, i32
  }
  func.func @transform_14(%arg0: i32, %arg1: i32) -> (i32, i32) {
    %c0_i32 = arith.constant 0 : i32
    %c0_i32_0 = arith.constant 0 : i32
    %c0_i32_1 = arith.constant 0 : i32
    return %c0_i32, %c0_i32_0 : i32, i32
  }
  func.func @transform_15(%arg0: i32, %arg1: i32) -> (i32, i32) {
    %c0_i32 = arith.constant 0 : i32
    %c0_i32_0 = arith.constant 0 : i32
    %c0_i32_1 = arith.constant 0 : i32
    return %c0_i32, %c0_i32_0 : i32, i32
  }
  func.func @transform_16(%arg0: i32, %arg1: i32) -> (i32, i32) {
    %c0_i32 = arith.constant 0 : i32
    %c0_i32_0 = arith.constant 0 : i32
    %c0_i32_1 = arith.constant 0 : i32
    return %c0_i32, %c0_i32_0 : i32, i32
  }
  func.func @transform_17(%arg0: i32, %arg1: i32) -> (i32, i32) {
    %c0_i32 = arith.constant 0 : i32
    %c0_i32_0 = arith.constant 0 : i32
    %c0_i32_1 = arith.constant 0 : i32
    return %c0_i32, %c0_i32_0 : i32, i32
  }
  func.func @transform_18(%arg0: i32, %arg1: i32) -> (i32, i32) {
    %c0_i32 = arith.constant 0 : i32
    %c0_i32_0 = arith.constant 0 : i32
    %c0_i32_1 = arith.constant 0 : i32
    return %c0_i32, %c0_i32_0 : i32, i32
  }
  func.func @transform_19(%arg0: i32, %arg1: i32) -> (i32, i32) {
    %c0_i32 = arith.constant 0 : i32
    %c0_i32_0 = arith.constant 0 : i32
    %c0_i32_1 = arith.constant 0 : i32
    return %c0_i32, %c0_i32_0 : i32, i32
  }
  func.func @transform_20(%arg0: i32, %arg1: i32) -> (i32, i32, i32) {
    %c0_i32 = arith.constant 0 : i32
    %c0_i32_0 = arith.constant 0 : i32
    return %arg0, %arg1, %c0_i32 : i32, i32, i32
  }
}

</mosaic_0001>

<bundles_post_ra>
// kernel: tpu_custom_call.1
= control target key start
LH: loop header
LB: loop body
LE: loop exit
PB: predicated region body
PF: predicated region fallthrough
CT: control target
= control target key end

     0   :  { %s3465_s0 = inlined_call_operand.vmem [shape: f32[2,8,32], index: 0, kind: input, shape index: {}]   ;;  %s3466_s1 = inlined_call_operand.hbm [shape: bf16[2,8,8], index: 1, kind: input, shape index: {}]   ;;  %s3467_s2 = inlined_call_operand.vmem [shape: bf16[2,1,8], index: 2, kind: input, shape index: {}]   ;;  %s3468_s3 = inlined_call_operand.hbm [shape: f32[1,8,32], index: 3, kind: input, shape index: {}]   ;;  %s3469_s4 = inlined_call_operand.hbm [shape: f32[1,32], index: 4, kind: input, shape index: {}]   ;;  %s3470_s5 = inlined_call_operand.hbm [shape: f32[1,32], index: 5, kind: input, shape index: {}]   ;;  %s3471_s6 = inlined_call_operand.vmem [shape: bf16[32,32], index: 6, kind: input, shape index: {}]   ;;  %s3472_s7 = inlined_call_operand.hbm [shape: f32[1,32], index: 7, kind: input, shape index: {}]   ;;  %s3473_s8 = inlined_call_operand.vmem [shape: bf16[32,32], index: 8, kind: input, shape index: {}]   ;;  %s3474_s9 = inlined_call_operand.hbm [shape: f32[1,32], index: 9, kind: input, shape index: {}]   ;;  %s3475_s10 = inlined_call_operand.vmem [shape: bf16[32,32], index: 10, kind: input, shape index: {}]   ;;  %s3476_s11 = inlined_call_operand.hbm [shape: f32[1,32], index: 11, kind: input, shape index: {}]   ;;  %s3477_s12 = inlined_call_operand.hbm [shape: bf16[32,32], index: 12, kind: input, shape index: {}]   ;;  %s3478_s13 = inlined_call_operand.hbm [shape: f32[1,32], index: 13, kind: input, shape index: {}]   ;;  %s3479_s14 = inlined_call_operand.hbm [shape: f32[1,32], index: 14, kind: input, shape index: {}]   ;;  %s3480_s15 = inlined_call_operand.hbm [shape: f32[1,32], index: 15, kind: input, shape index: {}]   ;;  %s3481_s16 = inlined_call_operand.vmem [shape: bf16[32,64], index: 16, kind: input, shape index: {}]   ;;  %s3482_s17 = inlined_call_operand.vmem [shape: f32[1,64], index: 17, kind: input, shape index: {}]   ;;  %s3483_s18 = inlined_call_operand.vmem [shape: bf16[64,32], index: 18, kind: input, shape index: {}]   ;;  %s3484_s19 = inlined_call_operand.vmem [shape: f32[1,32], index: 19, kind: input, shape index: {}]   ;;  %s3485_s20 = inlined_call_operand.hbm [shape: f32[2,8,32], index: 20, kind: output, shape index: {}]  }
   0x1   :  { %3493 = sst [smem:[#allocation32_spill]] %s3465_s0 }
   0x2   :  { %3494 = sst [smem:[#allocation33_spill]] %s3466_s1 }
   0x3   :  { %3495 = sst [smem:[#allocation34_spill]] %s3467_s2 }
   0x4   :  { %3496 = sst [smem:[#allocation35_spill]] %s3468_s3 }
   0x5   :  { %3497 = sst [smem:[#allocation36_spill]] %s3469_s4 }
   0x6   :  { %3498 = sst [smem:[#allocation37_spill]] %s3470_s5 }
   0x7   :  { %3499 = sst [smem:[#allocation38_spill]] %s3472_s7 }
   0x8   :  { %3500 = sst [smem:[#allocation39_spill]] %s3474_s9 }
   0x9   :  { %3501 = sst [smem:[#allocation40_spill]] %s3476_s11 }
   0xa   :  { %3502 = sst [smem:[#allocation41_spill]] %s3477_s12 }
   0xb   :  { %3503 = sst [smem:[#allocation42_spill]] %s3478_s13 }
   0xc   :  { %3504 = sst [smem:[#allocation43_spill]] %s3479_s14 }
   0xd   :  { %3505 = sst [smem:[#allocation44_spill]] %s3480_s15 }
   0xe   :  { %3506 = sst [smem:[#allocation45_spill]] %s3481_s16 }
   0xf   :  { %3507 = sst [smem:[#allocation46_spill]] %s3482_s17 }
  0x10   :  { %3508 = sst [smem:[#allocation47_spill]] %s3483_s18 }
  0x11   :  { %3509 = sst [smem:[#allocation48_spill]] %s3484_s19 }
  0x12   :  { %3510 = sst [smem:[#allocation49_spill]] %s3485_s20 }
  0x13   :  { %25 = vsyncpa [#allocation7], 0 }
  0x14   :  { %27 = vsyncpa [#allocation7 + $0x1], 0 }
  0x15   :  { %28 = vsyncpa [#allocation10], 0 }
  0x16   :  { %29 = vsyncpa [#allocation13], 0 }
  0x17   :  { %30 = vsyncpa [#allocation16], 0 }
  0x18   :  { %31 = vsyncpa [#allocation19], 0 }
  0x19   :  { %32 = vsyncpa [#allocation22], 0 }
  0x1a   :  { %33 = vsyncpa [#allocation8], 0 }
  0x1b   :  { %35 = vsyncpa [#allocation8 + $0x1], 0  ;;  %s3030_s1 = smov 0   ;;  %s3032_s22 = smov 0  }
  0x1c   :  { %s3034_s23 = smov 0   ;;  %s3036_s24 = smov 0  }
  0x1d   :  { %s3038_s2 = smov 0   ;;  %s3040_s25 = smov 0  }
  0x1e LB: > { %s3486_s3 = sadd.s32 4294967295, %s2901_s25   ;;  %p2081_p0 = scmp.ge.s32.totalorder %s2901_s25, 1  ;;  %s2901_s25 = sphi %s3040_s25, %s41_s25   ;;  %s2897_s2 = sphi %s3038_s2, %s3547_s2   ;;  %s2893_s24 = sphi %s3036_s24, %s3546_s24   ;;  %s2889_s23 = sphi %s3034_s23, %s3545_s23   ;;  %s2885_s22 = sphi %s3032_s22, %s3544_s22   ;;  %s2881_s1 = sphi %s3030_s1, %s3543_s1  }
  0x1f   : > { %p3064_p1 = scmp.eq.s32.totalorder %s3486_s3, 0  ;;  %p523_p2 = scmp.lt.s32.totalorder %s2901_s25, 3 }
  0x20   : > { %s2903_s28 = smov [#allocation9]   ;;  %s2904_s29 = smov [#allocation12]  }
  0x21   : > { %s3511_s26 = scalar_select %p3064_p1, 1, 0 }
  0x22   : > { %p3069_p3 = pnand %p2081_p0, %p523_p2  ;;  %s536_s4 = sshll.u32 %s2903_s28, 4  ;;  %s537_s4 = int_to_ptr.vmem [resolvable:$true] %s536_s4 }
  0x23   : > { %s558_s30 = sshll.u32 %s2904_s29, 4  ;;  %s2905_s21 = smov [#allocation15]   ;;  %s559_s30 = int_to_ptr.vmem [resolvable:$true] %s558_s30 }
  0x24   : > { %s3512_s27 = scalar_select %p3069_p3, 1, 0 }
  0x25   : > { %p2344_p5 = pneg %p3069_p3  ;;  %s586_s3 = sshll.u32 %s2905_s21, 4  ;;  %s3082_s3 = int_to_ptr.vmem [resolvable:$true] %s586_s3 }
  0x26   : > { %s2524_s20 = scalar_lea.vmem %s537_s4, 128  ;;  %p2532_p11 = scmp.lt.s32.totalorder %s537_s4, %s537_s4 }
  0x27   : > { %p3078_p6 = pnand %p2344_p5, %p3064_p1  ;;  %p2525_p8 = scmp.ne.s32.totalorder %s537_s4, %s2524_s20 }
  0x28   : > { %p2533_p12 = scmp.lt.s32.totalorder %s2524_s20, %s2524_s20 }
  0x29   : > { %p3086_p7 = pneg %p3078_p6 }
  0x2a   : > { %p2534_p13 = por %p2533_p12, %p2532_p11 }
  0x2b   : > { %p2527_p9 = pnand %p2525_p8, %p3086_p7 }
  0x2d   : > { %p2528_p10 = pneg %p2527_p9 }
  0x2f   : > { %p2535_p0 = pnand %p2534_p13, %p2528_p10 }
  0x31   : > { %2538 = shalt.err (!%p2535_p0)
}
  0x32   : > { %s3515_s19 = sld [smem:[#allocation35_spill]]  ;;  %s2550_s17 = scalar_lea.vmem %s559_s30, 16 }
  0x33   : > { %p2551_p2 = scmp.ne.s32.totalorder %s559_s30, %s2550_s17  ;;  %s2557_s18 = scalar_lea.vmem %s559_s30, 32 }
  0x34   : > { %p2558_p8 = scmp.lt.s32.totalorder %s559_s30, %s559_s30  ;;  %p2559_p9 = scmp.lt.s32.totalorder %s2557_s18, %s2550_s17 }
  0x35   : > { %p2553_p5 = pnand %p2551_p2, %p3086_p7 }
  0x36   : > { %p2560_p3 = por %p2559_p9, %p2558_p8 }
  0x37   : > { %p2554_p4 = pneg %p2553_p5 }
  0x38   : > { %2347 = dma.hbm_to_vmem [thread:$0]  (!%p3078_p6), %s3515_s19, 128, %s537_s4, [#allocation10]  }
  0x39   : > { %p2561_p1 = pnand %p2560_p3, %p2554_p4 }
  0x3b   : > { %2564 = shalt.err (!%p2561_p1)
}
  0x3c   : > { %s3516_s5 = sld [smem:[#allocation37_spill]]  ;;  %s2576_s19 = scalar_lea.vmem %s3082_s3, 16 }
  0x3d   : > { %p2577_p10 = scmp.ne.s32.totalorder %s3082_s3, %s2576_s19  ;;  %s2583_s17 = scalar_lea.vmem %s3082_s3, 32 }
  0x3e   : > { %p2584_p3 = scmp.lt.s32.totalorder %s3082_s3, %s3082_s3  ;;  %p2585_p1 = scmp.lt.s32.totalorder %s2583_s17, %s2576_s19 }
  0x3f   : > { %p2579_p11 = pnand %p2577_p10, %p3086_p7 }
  0x40   : > { %p2586_p4 = por %p2585_p1, %p2584_p3 }
  0x41   : > { %p2580_p12 = pneg %p2579_p11 }
  0x42   : > { %2353 = dma.hbm_to_vmem [thread:$0]  (!%p3078_p6), %s3516_s5, 16, %s559_s30, [#allocation13]  }
  0x43   : > { %p2587_p13 = pnand %p2586_p4, %p2580_p12 }
  0x45   : > { %2590 = shalt.err (!%p2587_p13)
}
  0x46   : > { %s3517_s9 = sld [smem:[#allocation39_spill]]  ;;  %s2906_s4 = smov [#allocation18]  }
  0x47   : > { %s610_s30 = sshll.u32 %s2906_s4, 4  ;;  %s611_s30 = int_to_ptr.vmem [resolvable:$true] %s610_s30 }
  0x48   : > { %s2602_s29 = scalar_lea.vmem %s611_s30, 256  ;;  %p2610_p8 = scmp.lt.s32.totalorder %s611_s30, %s611_s30 }
  0x49   : > { %p2603_p0 = scmp.ne.s32.totalorder %s611_s30, %s2602_s29  ;;  %p2611_p9 = scmp.lt.s32.totalorder %s2602_s29, %s2602_s29 }
  0x4b   : > { %p2605_p2 = pnand %p2603_p0, %p3086_p7  ;;  %p2612_p10 = por %p2611_p9, %p2610_p8 }
  0x4c   : > { %2359 = dma.hbm_to_vmem [thread:$0]  (!%p3078_p6), %s3517_s9, 16, %s3082_s3, [#allocation16]  }
  0x4d   : > { %p2606_p5 = pneg %p2605_p2 }
  0x4f   : > { %p2613_p11 = pnand %p2612_p10, %p2606_p5 }
  0x51   : > { %2616 = shalt.err (!%p2613_p11)
}
  0x52   : > { %s2907_s21 = smov 64   ;;  %s2908_s20 = smov 4  }
  0x53   : > { %s3518_s12 = sld [smem:[#allocation41_spill]]  ;;  %s2909_s17 = smov [#allocation21]  }
  0x54   : > { %s635_s16 = sshll.u32 %s2909_s17, 4  ;;  %s2910_s18 = smov [#allocation11]   ;;  %s636_s16 = int_to_ptr.vmem [resolvable:$true] %s635_s16 }
  0x55   : > { %s547_s4 = sshll.u32 %s2910_s18, 4  ;;  %s2628_s5 = scalar_lea.vmem %s636_s16, 16  ;;  %s548_s4 = int_to_ptr.vmem [resolvable:$true] %s547_s4 }
  0x56   : > { %p2629_p12 = scmp.ne.s32.totalorder %s636_s16, %s2628_s5  ;;  %s2635_s29 = scalar_lea.vmem %s636_s16, 32 }
  0x57   : > { %p2636_p4 = scmp.lt.s32.totalorder %s636_s16, %s636_s16  ;;  %p2637_p13 = scmp.lt.s32.totalorder %s2635_s29, %s2628_s5 }
  0x58   : > { %p2631_p3 = pnand %p2629_p12, %p3086_p7 }
  0x59   : > { %2365 = dma.hbm_to_vmem [thread:$0]  (!%p3078_p6), %s3518_s12, 256, %s611_s30, [#allocation19], %s2907_s21, %s2907_s21, %s2908_s20  }
  0x5a   : > { %p2632_p1 = pneg %p2631_p3  ;;  %p2638_p0 = por %p2637_p13, %p2636_p4 }
  0x5c   : > { %p2639_p2 = pnand %p2638_p0, %p2632_p1 }
  0x5e   : > { %2642 = shalt.err (!%p2639_p2)
}
  0x5f   : > { %s3519_s14 = sld [smem:[#allocation43_spill]]  ;;  %s2654_s20 = scalar_lea.vmem %s548_s4, 16 }
  0x60   : > { %p2655_p5 = scmp.ne.s32.totalorder %s548_s4, %s2654_s20  ;;  %s2661_s19 = scalar_lea.vmem %s548_s4, 32 }
  0x61   : > { %p2662_p10 = scmp.lt.s32.totalorder %s548_s4, %s548_s4  ;;  %p2663_p11 = scmp.lt.s32.totalorder %s2661_s19, %s2654_s20 }
  0x62   : > { %p2657_p8 = pnand %p2655_p5, %p3086_p7 }
  0x63   : > { %p2664_p12 = por %p2663_p11, %p2662_p10 }
  0x64   : > { %p2658_p9 = pneg %p2657_p8 }
  0x65   : > { %2371 = dma.hbm_to_vmem [thread:$0]  (!%p3078_p6), %s3519_s14, 16, %s636_s16, [#allocation22]  }
  0x66   : > { %p2665_p3 = pnand %p2664_p12, %p2658_p9 }
  0x68   : > { %2668 = shalt.err (!%p2665_p3)
}
  0x69   : > { %s3520_s17 = sld [smem:[#allocation36_spill]]  ;;  %s2911_s18 = smov [#allocation14]  }
  0x6a   : > { %s572_s16 = sshll.u32 %s2911_s18, 4  ;;  %s2912_s29 = smov [#allocation17]   ;;  %s573_s16 = int_to_ptr.vmem [resolvable:$true] %s572_s16 }
  0x6b   : > { %s600_s30 = sshll.u32 %s2912_s29, 4  ;;  %s2680_s21 = scalar_lea.vmem %s573_s16, 16  ;;  %s601_s30 = int_to_ptr.vmem [resolvable:$true] %s600_s30 }
  0x6c   : > { %p2681_p1 = scmp.ne.s32.totalorder %s573_s16, %s2680_s21  ;;  %s2687_s20 = scalar_lea.vmem %s573_s16, 32 }
  0x6d   : > { %p2688_p0 = scmp.lt.s32.totalorder %s573_s16, %s573_s16  ;;  %p2689_p2 = scmp.lt.s32.totalorder %s2687_s20, %s2680_s21 }
  0x6e   : > { %p2683_p4 = pnand %p2681_p1, %p3086_p7 }
  0x6f   : > { %2350 = dma.hbm_to_vmem [thread:$0]  (!%p3078_p6), %s3520_s17, 16, %s548_s4, [#allocation10]  }
  0x70   : > { %p2684_p13 = pneg %p2683_p4  ;;  %p2690_p5 = por %p2689_p2, %p2688_p0 }
  0x72   : > { %p2691_p8 = pnand %p2690_p5, %p2684_p13 }
  0x74   : > { %2694 = shalt.err (!%p2691_p8)
}
  0x75   : > { %s3521_s7 = sld [smem:[#allocation38_spill]]  ;;  %s2706_s5 = scalar_lea.vmem %s601_s30, 16 }
  0x76   : > { %p2707_p9 = scmp.ne.s32.totalorder %s601_s30, %s2706_s5  ;;  %s2713_s3 = scalar_lea.vmem %s601_s30, 32 }
  0x77   : > { %p2714_p12 = scmp.lt.s32.totalorder %s601_s30, %s601_s30  ;;  %p2715_p3 = scmp.lt.s32.totalorder %s2713_s3, %s2706_s5 }
  0x78   : > { %p2709_p10 = pnand %p2707_p9, %p3086_p7 }
  0x79   : > { %p2716_p1 = por %p2715_p3, %p2714_p12 }
  0x7a   : > { %p2710_p11 = pneg %p2709_p10 }
  0x7b   : > { %2356 = dma.hbm_to_vmem [thread:$0]  (!%p3078_p6), %s3521_s7, 16, %s573_s16, [#allocation13]  }
  0x7c   : > { %p2717_p4 = pnand %p2716_p1, %p2710_p11 }
  0x7e   : > { %2720 = shalt.err (!%p2717_p4)
}
  0x7f   : > { %s3522_s11 = sld [smem:[#allocation40_spill]]  ;;  %s2913_s29 = smov [#allocation20]  }
  0x80   : > { %s624_s16 = sshll.u32 %s2913_s29, 4  ;;  %s2914_s21 = smov [#allocation23]   ;;  %s625_s16 = int_to_ptr.vmem [resolvable:$true] %s624_s16 }
  0x81   : > { %s646_s20 = sshll.u32 %s2914_s21, 4  ;;  %s2732_s4 = scalar_lea.vmem %s625_s16, 16  ;;  %s647_s20 = int_to_ptr.vmem [resolvable:$true] %s646_s20 }
  0x82   : > { %p2733_p13 = scmp.ne.s32.totalorder %s625_s16, %s2732_s4  ;;  %s2739_s19 = scalar_lea.vmem %s625_s16, 32 }
  0x83   : > { %p2740_p5 = scmp.lt.s32.totalorder %s625_s16, %s625_s16  ;;  %p2741_p8 = scmp.lt.s32.totalorder %s2739_s19, %s2732_s4 }
  0x84   : > { %p2735_p0 = pnand %p2733_p13, %p3086_p7 }
  0x85   : > { %2362 = dma.hbm_to_vmem [thread:$0]  (!%p3078_p6), %s3522_s11, 16, %s601_s30, [#allocation16]  }
  0x86   : > { %p2736_p2 = pneg %p2735_p0  ;;  %p2742_p9 = por %p2741_p8, %p2740_p5 }
  0x88   : > { %p2743_p10 = pnand %p2742_p9, %p2736_p2 }
  0x8a   : > { %2746 = shalt.err (!%p2743_p10)
}
  0x8b   : > { %s3523_s13 = sld [smem:[#allocation42_spill]]  ;;  %s2758_s3 = scalar_lea.vmem %s647_s20, 16 }
  0x8c   : > { %p2759_p11 = scmp.ne.s32.totalorder %s647_s20, %s2758_s3  ;;  %s2765_s17 = scalar_lea.vmem %s647_s20, 32 }
  0x8d   : > { %p2766_p1 = scmp.lt.s32.totalorder %s647_s20, %s647_s20  ;;  %p2767_p4 = scmp.lt.s32.totalorder %s2765_s17, %s2758_s3 }
  0x8e   : > { %p2761_p12 = pnand %p2759_p11, %p3086_p7 }
  0x8f   : > { %p2768_p13 = por %p2767_p4, %p2766_p1 }
  0x90   : > { %p2762_p3 = pneg %p2761_p12 }
  0x91   : > { %2368 = dma.hbm_to_vmem [thread:$0]  (!%p3078_p6), %s3523_s13, 16, %s625_s16, [#allocation19]  }
  0x92   : > { %p2769_p0 = pnand %p2768_p13, %p2762_p3 }
  0x94   : > { %2772 = shalt.err (!%p2769_p0)
}
  0x95   : > { %s3524_s15 = sld [smem:[#allocation44_spill]]  ;;  %s2080_s28 = sadd.s32 4294967294, %s2901_s25  }
  0x96   : > { %s53_s16 = sadd.s32 1, %s2897_s2  ;;  %s88_s0 = sadd.s32 1, %s2889_s23 }
  0x97   : > { %p55_p7 = scmp.ge.s32.totalorder %s53_s16, 2  ;;  %p95_p2 = scmp.ne.s32.totalorder %s2889_s23, %s2885_s22 }
  0x98   : > { %p96_p5 = scmp.eq.s32.totalorder %s2901_s25, 0  ;;  %p101_p9 = scmp.ne.s32.totalorder %s2885_s22, %s2881_s1 }
  0x99   : > { %s3549_s16 = smov (%p55_p7, %s53_s16), 0  ;;  %s3526_s4 = sadd.s32 4294967295, %s2901_s25  }
  0x9a   : > { %p3174_p8 = por %p96_p5, %p95_p2  ;;  %p3527_p11 = scmp.ne.s32.totalorder %s3511_s26, 0 }
  0x9b   : > { %2374 = dma.hbm_to_vmem [thread:$0]  (!%p3078_p6), %s3524_s15, 16, %s647_s20, [#allocation22]  }
  0x9c   : > { %s83_s20 = ssub.s32 %s2897_s2, %s3549_s16  ;;  %p510_p6 = scmp.eq.s32.totalorder %s3526_s4, 1 }
  0x9d   : > { %p86_p10 = scmp.eq.s32.totalorder %s83_s20, 0  ;;  %p3186_p12 = por %p3527_p11, %p101_p9 }
  0x9e   : > { %p3190_p3 = por %p510_p6, %p95_p2  ;;  %p516_p1 = scmp.eq.s32.totalorder %s2080_s28, 1 }
  0x9f   : > { %s3195_s5 = scalar_select %p86_p10, %s2889_s23, %s88_s0  }
  0xa0   : > { %p3197_p4 = por %p516_p1, %p101_p9  ;;  %p2393_p13 = scmp.lt.s32.totalorder %s2901_s25, 2 }
  0xa1   : > { %s676_s17 = sand.u32 1, %s2889_s23   ;;  %s2094_s18 = sshll.u32 %s2897_s2, 6 }
  0xa2   : > { %s2093_s29 = sshll.u32 %s676_s17, 2  ;;  %s3531_s7 = sld [smem:[#allocation33_spill]] }
  0xa3   : > { %s680_s11 = scalar_lea.vmem [#allocation6], %s2093_s29  ;;  %p3209_p0 = pnand %p2393_p13, %p3174_p8 }
  0xa4   : > { %s688_s12 = sshll.u32 %s680_s11, 4  ;;  %s677_s28 = scalar_lea.sflag [#allocation7], %s676_s17  ;;  %s689_s12 = int_to_ptr.vmem [resolvable:$true] %s688_s12 }
  0xa5   : > { %p2775_p7 = pneg %p3209_p0  ;;  %s2786_s0 = scalar_lea.vmem %s689_s12, 64 }
  0xa6   : > { %p2787_p2 = scmp.ne.s32.totalorder %s689_s12, %s2786_s0  ;;  %s2915_s14 = smov [#allocation6]  }
  0xa7   : > { %s2791_s15 = sshll.u32 %s2915_s14, 4  ;;  %s2792_s15 = int_to_ptr.vmem [resolvable:$false] %s2791_s15 }
  0xa8   : > { %s686_s9 = scalar_lea.hbm %s3531_s7, %s2094_s18  ;;  %p2789_p5 = pnand %p2787_p2, %p2775_p7 }
  0xa9   : > { %s2793_s7 = scalar_lea.vmem %s2792_s15, 128  ;;  %p2794_p6 = scmp.lt.s32.totalorder %s689_s12, %s2792_s15 }
  0xaa   : > { %p2790_p9 = pneg %p2789_p5  ;;  %p2795_p10 = scmp.lt.s32.totalorder %s2793_s7, %s2786_s0 }
  0xac   : > { %p2796_p11 = por %p2795_p10, %p2794_p6 }
  0xae   : > { %p2797_p8 = pnand %p2796_p11, %p2790_p9 }
  0xb0   : > { %2800 = shalt.err (!%p2797_p8)
}
  0xb1   : > { %2378 = dma.hbm_to_vmem [thread:$0]  (!%p3209_p0), %s686_s9, 64, %s689_s12, %s677_s28  }
  0xb2   : > { %p3533_p1 = scmp.ne.s32.totalorder %s3512_s27, 0 }
  0xb3   : > { %s3220_s11 = sand.u32 (!%p3533_p1), 1, %s2885_s22  }
  0xb4   : > { %703 = sbr.rel (%p3533_p1) target bundleno = 2660 (0xa64), region = 100  ;;  %s2096_s14 = sshll.u32 (!%p3533_p1), %s3220_s11, 2 }
  0xb5   : > { %s706_s21 = scalar_lea.sflag (!%p3533_p1), [#allocation7], %s3220_s11  ;;  %s3224_s17 = scalar_lea.vmem (!%p3533_p1), [#allocation6], %s2096_s14 }
  0xb9   : > { %2852 = dma.done.wait (%p3186_p12), %s706_s21, 64  }
  0xba   : > { %2854 = vsyncadd (%p3186_p12), %s706_s21, 4294967232  ;;  %p3534_p13 = scmp.ne.s32.totalorder %s3511_s26, 0 }
  0xbc   : > { %2856 = dma.done.wait (%p3534_p13), [#allocation10], 144  }
  0xbd   : > { %2858 = vsyncadd (%p3534_p13), [#allocation10], 4294967152 }
  0xbe   : > { %2860 = dma.done.wait (%p3534_p13), [#allocation13], 32  }
  0xbf   : > { %2862 = vsyncadd (%p3534_p13), [#allocation13], 4294967264 }
  0xc0   : > { %2864 = dma.done.wait (%p3534_p13), [#allocation16], 32  }
  0xc1   : > { %2866 = vsyncadd (%p3534_p13), [#allocation16], 4294967264 }
  0xc2   : > { %2868 = dma.done.wait (%p3534_p13), [#allocation19], 272  }
  0xc3   : > { %2870 = vsyncadd (%p3534_p13), [#allocation19], 4294967024 }
  0xc4   : > { %2872 = dma.done.wait (%p3534_p13), [#allocation22], 32  }
  0xc5   : > { %2874 = vsyncadd (%p3534_p13), [#allocation22], 4294967264  ;;  %p813_p12 = scmp.lt.s32.totalorder %s2893_s24, 1  ;;  %s3535_s27 = sld [smem:[#allocation32_spill]]  ;;  %vm828_vm0 = vcmask 261120   ;;  %v2474_v7 = vld [vmem:[%s3475_s10 + $0x8] sm:$0xff]  }
  0xc6   : > { %v2475_v8 = vld [vmem:[%s3473_s8 + $0x8] sm:$0xff]   ;;  %v2916_v9 = vmov 0.0   ;;  %v2476_v10 = vld [vmem:[%s3475_s10] sm:$0xff]   ;;  %vm2917_vm1 = vmmov 0   ;;  %vm860_vm2 = vcmask 257024   ;;  %vm1124_vm3 = vcmask 1043456  }
  0xc7   : > { %s3252_s9 = scalar_select %p813_p12, %s2893_s24, 1  ;;  %2208 = vmatprep.subr.bf16.mxu1 %v2916_v9  ;;  %2200 = vmatprep.subr.bf16.mxu0 %v2916_v9  ;;  %v2477_v11 = vld [vmem:[%s3473_s8] sm:$0xff]   ;;  %v2109_v16 = vld [vmem:[#allocation11] ss:$0 sm:$0xff]  ;;  %v2110_v18 = vld [vmem:[#allocation12] ss:$0 sm:$0xff] }
  0xc8   : > { %2209 = vmatpush3.bf16.msra.mxu1 %v2474_v7  ;;  %2201 = vmatpush3.bf16.msra.mxu0 %v2475_v8  ;;  %v857_v20 = vld [vmem:[#allocation9] sm:$0xff]  ;;  %v2119_v28 = vld [vmem:[#allocation17] ss:$0 sm:$0xff]  ;;  %v2111_v30 = vld [vmem:[#allocation15] ss:$0 sm:$0xff]  ;;  %s2918_s15 = smov 112  }
  0xc9   : > { %s2108_s12 = sshll.u32 %s3252_s9, 3  ;;  %2210 = vmatprep.subr.bf16.mxu1 %v2916_v9  ;;  %2202 = vmatprep.subr.bf16.mxu0 %v2916_v9  ;;  %v2478_v24 = vld [vmem:[%s3471_s6 + $0x8] sm:$0xff]   ;;  %v2479_v26 = vld [vmem:[%s3471_s6] sm:$0xff]   ;;  %v2123_v42 = vld [vmem:[#allocation14] ss:$0 sm:$0xff]  ;;  %vm959_vm4 = vcmask 60416  }
  0xca   : > { %2212 = vmatprep.mubr.msk.bf16.mxu1 %vm2917_vm1, %v2916_v9  ;;  %2204 = vmatprep.mubr.msk.bf16.mxu0 %vm2917_vm1, %v2916_v9  ;;  %vm1120_vm5 = vcmask 64512   ;;  %s3536_s29 = sld [smem:[#allocation34_spill]]  ;;  %s2923_s4 = smov 24   ;;  %vm1354_vm6 = vcmask 126016   ;;  %vm1478_vm7 = vcmask 191616   ;;  %vm1602_vm8 = vcmask 257216  }
  0xcb   : > { %s816_s19 = scalar_lea.vmem %s3535_s27, %s2108_s12  ;;  %s2919_s27 = smov 120   ;;  %vm1818_vm9 = vcmask 523264  }
  0xcc   : > { %v3258_v0 = vld [vmem:[%s816_s19] sm:$0xff]  ;;  %2211 = vmatpush3.bf16.msra.mxu1 %v2476_v10  ;;  %2203 = vmatpush3.bf16.msra.mxu0 %v2477_v11  ;;  %s2920_s19 = smov 104   ;;  %s3537_s7 = sld [smem:[#allocation45_spill]] }
  0xcd   : > { %v829_v1 = vsel %vm828_vm0, %v3258_v0, 0.0  ;;  %2216 = vmatprep.subr.bf16.mxu0 %v2916_v9  ;;  %2224 = vmatprep.subr.bf16.mxu1 %v2916_v9  ;;  %v1109_v11 = vld [vmem:[%s3224_s17] sm:$0xf]  ;;  %s2921_s17 = smov 8   ;;  %s2107_s28 = sshll.u32 %s3220_s11, 3 }
  0xce   : > { %830 = vadd.xlane.f32.xlu0 %v829_v1  ;;  %s3540_s21 = sld [smem:[#allocation48_spill]]  ;;  %s2158_s12 = sshll.u32 %s2893_s24, 7 }
  0xcf   : > { %s812_s13 = scalar_lea.vmem [#allocation24], %s2107_s28  ;;  %s3541_s18 = sld [smem:[#allocation49_spill]] }
  0xd0   : > { %s819_s20 = scalar_lea.vmem %s3536_s29, %s3252_s9  ;;  %s2922_s9 = smov 16  }
  0xd1   : > { %v1111_v7 = vld [vmem:[%s819_s20] sm:$0x1]  ;;  %s1865_s24 = scalar_lea.sflag [#allocation8], %s3220_s11 }
  0xd2   : > { %v1112_v8 = vunpack.c.l.bf16 %v1111_v7 }
  0xd5   : > { %s3416_s29 = scalar_lea.hbm %s3541_s18, %s2158_s12 }
 0x157   : > { %v831_v2 = vpop.xlane.xlu0 %830 }
 0x158   : > { %v833_v3 = vmul.f32 0.03125, %v831_v2 }
 0x15a   : > { %v834_v4 = vsub.f32 %v3258_v0, %v833_v3 }
 0x15c   : > { %v835_v5 = vmul.f32 %v834_v4, %v834_v4 }
 0x15e   : > { %v836_v6 = vsel %vm828_vm0, %v835_v5, 0.0  ;;  %v1113_v5 = vlaneseq }
 0x15f   : > { %837 = vadd.xlane.f32.xlu0 %v836_v6 }
 0x160   : > { %v1114_v6 = vshrl.u32 %v1113_v5, 7 }
 0x162   : > { %v1115_v10 = vsub.s32 0, %v1114_v6 }
 0x1e8   : > { %v838_v12 = vpop.xlane.xlu0 %837 }
 0x1e9   : > { %v839_v13 = vmul.f32 0.03125, %v838_v12  ;;  %v1116_v12 = vrot.slane %v1112_v8, %v1115_v10 }
 0x1eb   : > { %v840_v14 = vadd.f32 1e-05, %v839_v13  ;;  %v1110_v13 = vunpack.c.l.bf16 %v1109_v11 }
 0x1ed   : > { %2491 = vrsqrt.f32 %v840_v14  ;;  %v1117_v14 = vadd.f32 %v1116_v12, %v1110_v13 }
 0x1fa   : > { %v2492_v15 = vpop.eup %2491 }
 0x1fb   : > { %v842_v17 = vmul.f32 %v2492_v15, %v834_v4 }
 0x1fd   : > { %v849_v19 = vmul.f32 %v2109_v16, %v842_v17 }
 0x1ff   : > { %v856_v21 = vadd.f32 %v2110_v18, %v849_v19 }
 0x201   : > { %v964_v22 = vpack.c.bf16 %v856_v21, %v856_v21  ;;  %v858_v23 = vadd.f32 %v857_v20, %v856_v21 }
 0x203   : > { %2213 = vmatmul.mubr.msk.bf16.vlgmr.msra.gmra.mxu1 %vm828_vm0, %v964_v22  ;;  %v859_v25 = vpack.c.bf16 %v858_v23, %v858_v23 }
 0x204   : > { %2226 = vmatprep.mubr.msk.bf16.mxu1 %vm2917_vm1, %v2916_v9 }
 0x205   : > { %861 = vst.msk [vmem:[#allocation2] sm:$0xf] %vm860_vm2, %v859_v25  ;;  %2205 = vmatmul.mubr.msk.bf16.vlgmr.msra.gmra.mxu0 %vm828_vm0, %v859_v25 }
 0x206   : > { %2217 = vmatpush3.bf16.msra.mxu0 %v2478_v24  ;;  %2220 = vmatprep.mubr.msk.bf16.mxu0 %vm2917_vm1, %v2916_v9 }
 0x207   : > { %2218 = vmatprep.subr.bf16.mxu0 %v2916_v9 }
 0x20a   : > { %2219 = vmatpush3.bf16.msra.mxu0 %v2479_v26 }
 0x20b   : > { %2230 = vmatprep.subr.bf16.mxu0 %v2916_v9 }
 0x20c   : > { %v1040_v27 = vld [vmem:[#allocation2] sm:$0xf] }
 0x20d   : > { %2221 = vmatmul.mubr.msk.bf16.vlgmr.msra.gmra.mxu0 %vm828_vm0, %v1040_v27 }
 0x20e   : > { %2232 = vmatprep.mubr.msk.bf16.mxu0 %vm2917_vm1, %v2916_v9 }
 0x2c3   : > { %v1025_v29 = vpop.f32.mrf.mxu1 }
 0x2c4   : > { %v1026_v31 = vadd.f32 %v2119_v28, %v1025_v29 }
 0x2c5   : > { %v922_v32 = vpop.f32.mrf.mxu0  ;;  %v2214_v33 = vpop.f32.mrf.mxu1 }
 0x2c6   : > { %v1031_v34 = vpack.c.bf16 %v1026_v31, %v1026_v31  ;;  %v923_v35 = vadd.f32 %v2111_v30, %v922_v32 }
 0x2c7   : > { %v2206_v36 = vpop.f32.mrf.mxu0  ;;  %v1028_v37 = vpop.f32.mrf.mxu1 }
 0x2c8   : > { %1032 = vst.msk [vmem:[#allocation4] sm:$0xf] %vm860_vm2, %v1031_v34  ;;  %v928_v38 = vpack.c.bf16 %v923_v35, %v923_v35 }
 0x2c9   : > { %v925_v39 = vpop.f32.mrf.mxu0  ;;  %v2215_v40 = vpop.f32.mrf.mxu1 }
 0x2ca   : > { %929 = vxpose.xlu1.c.b16.start.end [1/1] (short) (narrow) %v928_v38, 32 }
 0x2cb   : > { %v2207_v41 = vpop.f32.mrf.mxu0 }
 0x2cd   : > { %v1102_v43 = vpop.f32.mrf.mxu0 }
 0x2ce   : > { %v1103_v44 = vadd.f32 %v2123_v42, %v1102_v43 }
 0x2cf   : > { %v2222_v45 = vpop.f32.mrf.mxu0  ;;  %v1119_v46 = vld [vmem:[#allocation4] sm:$0xf] }
 0x2d0   : > { %v1108_v47 = vpack.c.bf16 %v1103_v44, %v1103_v44  ;;  %v1186_v48 = vsel %vm1124_vm3, %v1119_v46, 0 }
 0x2d1   : > { %v1105_v49 = vpop.f32.mrf.mxu0  ;;  %2231 = vmatpush3.bf16.msra.mxu0 %v1186_v48 }
 0x2d2   : > { %1358 = vrot.lane.b32.xlu0 %v1108_v47, %s2918_s15  ;;  %1234 = vrot.lane.b32.xlu1 %v1108_v47, %s2919_s27 }
 0x2d3   : > { %v2223_v50 = vpop.f32.mrf.mxu0  ;;  %2242 = vmatprep.subr.bf16.mxu0 %v2916_v9 }
 0x2d6   : > { %1482 = vrot.lane.b32.xlu1 %v1108_v47, %s2920_s19 }
 0x32c   : > { %v937_v51 = vpop.trf.xlu1 }
 0x32d   : > { %v2115_v52 = vcombine.low %v937_v51, %v937_v51  ;;  %v2116_v53 = vcombine.high %v937_v51, %v937_v51 }
 0x32f   : > { %960 = vst.msk [vmem:[#allocation3] sm:$0xf] %vm959_vm4, %v2115_v52  ;;  %961 = vst.msk [vmem:[#allocation3 + $0x4] sm:$0xf] %vm959_vm4, %v2116_v53 }
 0x330   : > { %v938_v54 = vpop.trf.xlu1 }
 0x331   : > { %v2117_v55 = vcombine.low %v938_v54, %v938_v54  ;;  %v2118_v56 = vcombine.high %v938_v54, %v938_v54 }
 0x333   : > { %962 = vst.msk [vmem:[#allocation3 + $0x8] sm:$0xf] %vm959_vm4, %v2117_v55  ;;  %963 = vst.msk [vmem:[#allocation3 + $0xc] sm:$0xf] %vm959_vm4, %v2118_v56 }
 0x336   : > { %v1118_v57 = vld [vmem:[#allocation3] sm:$0xf]  ;;  %v1231_v59 = vld [vmem:[#allocation3 + $0x4] sm:$0xf] }
 0x337   : > { %v1126_v58 = vsel %vm1124_vm3, %v1118_v57, 0  ;;  %v1240_v60 = vsel %vm1124_vm3, %v1231_v59, 0  ;;  %v2480_v57 = vld [vmem:[#allocation4] ss:$0 sps:$4 sm:$0xff]  }
 0x338   : > { %2225 = vmatpush3.bf16.msra.mxu1 %v1126_v58 }
 0x339   : > { %2236 = vmatprep.subr.bf16.mxu1 %v2916_v9 }
 0x33a   : > { %v1356_v61 = vld [vmem:[#allocation3 + $0x8] sm:$0xf]  ;;  %v1480_v1 = vld [vmem:[#allocation3 + $0xc] sm:$0xf] }
 0x33b   : > { %2227 = vmatmul.mubr.msk.bf16.vlgmr.msra.gmra.mxu1 %vm1120_vm5, %v1108_v47  ;;  %v1364_v62 = vsel %vm1124_vm3, %v1356_v61, 0  ;;  %v1488_v2 = vsel %vm1124_vm3, %v1480_v1, 0 }
 0x33c   : > { %2237 = vmatpush3.bf16.msra.mxu1 %v1240_v60  ;;  %2238 = vmatprep.mubr.msk.bf16.mxu1 %vm2917_vm1, %v2916_v9 }
 0x33d   : > { %2248 = vmatprep.subr.bf16.mxu1 %v2916_v9 }
 0x344   : > { %v1235_v63 = vpop.permute.xlu1 %1234  ;;  %v1359_v3 = vpop.permute.xlu0 %1358 }
 0x345   : > { %2239 = vmatmul.mubr.msk.bf16.vlgmr.msra.gmra.mxu1 %vm1120_vm5, %v1235_v63 }
 0x346   : > { %2249 = vmatpush3.bf16.msra.mxu1 %v1364_v62  ;;  %2250 = vmatprep.mubr.msk.bf16.mxu1 %vm2917_vm1, %v2916_v9  ;;  %v2481_v62 = vld [vmem:[#allocation4] ss:$0 sps:$4 sm:$0xff]  }
 0x347   : > { %2260 = vmatprep.subr.bf16.mxu1 %v2916_v9 }
 0x348   : > { %v1483_v4 = vpop.permute.xlu1 %1482 }
 0x34d   : > { %2251 = vmatmul.mubr.msk.bf16.vlgmr.msra.gmra.mxu1 %vm1120_vm5, %v1359_v3 }
 0x34e   : > { %2261 = vmatpush3.bf16.msra.mxu1 %v1488_v2  ;;  %2262 = vmatprep.mubr.msk.bf16.mxu1 %vm2917_vm1, %v2916_v9  ;;  %v2482_v2 = vld [vmem:[#allocation4] ss:$0 sps:$4 sm:$0xff]  }
 0x34f   : > { %2272 = vmatprep.subr.bf16.mxu1 %v2916_v9 }
 0x355   : > { %2263 = vmatmul.mubr.msk.bf16.vlgmr.msra.gmra.mxu1 %vm1120_vm5, %v1483_v4 }
 0x356   : > { %2276 = vmatprep.mubr.msk.bf16.mxu1 %vm2917_vm1, %v2916_v9 }
 0x3fb   : > { %v1162_v15 = vpop.f32.mrf.mxu1 }
 0x3fc   : > { %v1168_v16 = vmul.f32 0.35355338, %v1162_v15 }
 0x3fd   : > { %v2228_v17 = vpop.f32.mrf.mxu1 }
 0x3fe   : > { %v1169_v18 = vadd.f32 %v1168_v16, %v1117_v14 }
 0x3ff   : > { %v1165_v19 = vpop.f32.mrf.mxu1 }
 0x400   : > { %v1170_v20 = vsel %vm1120_vm5, %v1169_v18, -inf }
 0x401   : > { %1171 = vmax.xlane.f32.xlu1 %v1170_v20  ;;  %v2229_v21 = vpop.f32.mrf.mxu1 }
 0x405   : > { %v1276_v22 = vpop.f32.mrf.mxu1 }
 0x406   : > { %v1282_v23 = vmul.f32 0.35355338, %v1276_v22 }
 0x407   : > { %v2240_v24 = vpop.f32.mrf.mxu1 }
 0x408   : > { %v1283_v25 = vadd.f32 %v1282_v23, %v1117_v14 }
 0x409   : > { %v1279_v26 = vpop.f32.mrf.mxu1 }
 0x40a   : > { %v1284_v27 = vsel %vm1120_vm5, %v1283_v25, -inf }
 0x40b   : > { %1285 = vmax.xlane.f32.xlu0 %v1284_v27  ;;  %v2241_v28 = vpop.f32.mrf.mxu1 }
 0x40d   : > { %v1400_v29 = vpop.f32.mrf.mxu1 }
 0x40e   : > { %v1406_v30 = vmul.f32 0.35355338, %v1400_v29 }
 0x40f   : > { %v2252_v31 = vpop.f32.mrf.mxu1 }
 0x410   : > { %v1407_v32 = vadd.f32 %v1406_v30, %v1117_v14 }
 0x411   : > { %v1403_v33 = vpop.f32.mrf.mxu1 }
 0x412   : > { %v1408_v34 = vsel %vm1120_vm5, %v1407_v32, -inf }
 0x413   : > { %1409 = vmax.xlane.f32.xlu1 %v1408_v34  ;;  %v2253_v35 = vpop.f32.mrf.mxu1 }
 0x415   : > { %v1524_v36 = vpop.f32.mrf.mxu1 }
 0x416   : > { %v1530_v37 = vmul.f32 0.35355338, %v1524_v36  ;;  %v2483_v36 = vld [vmem:[#allocation18 + $0x8] sm:$0xff]  }
 0x417   : > { %v2264_v38 = vpop.f32.mrf.mxu1  ;;  %2273 = vmatpush3.bf16.msra.mxu1 %v2483_v36 }
 0x418   : > { %v1531_v39 = vadd.f32 %v1530_v37, %v1117_v14  ;;  %v2484_v38 = vld [vmem:[#allocation18] sm:$0xff]   ;;  %2274 = vmatprep.subr.bf16.mxu1 %v2916_v9 }
 0x419   : > { %v1527_v40 = vpop.f32.mrf.mxu1 }
 0x41a   : > { %v1532_v41 = vsel %vm1120_vm5, %v1531_v39, -inf }
 0x41b   : > { %1533 = vmax.xlane.f32.xlu1 %v1532_v41  ;;  %v2265_v42 = vpop.f32.mrf.mxu1  ;;  %2275 = vmatpush3.bf16.msra.mxu1 %v2484_v38 }
 0x41c   : > { %2288 = vmatprep.subr.bf16.mxu1 %v2916_v9 }
 0x48a   : > { %v1172_v43 = vpop.xlane.xlu1 %1171 }
 0x48b   : > { %v1173_v44 = vsub.f32 %v1169_v18, %v1172_v43 }
 0x48d   : > { %v1174_v45 = vmul.f32 1.442695, %v1173_v44 }
 0x48f   : > { %2493 = vpow2.f32 %v1174_v45 }
 0x494   : > { %v1286_v46 = vpop.xlane.xlu0 %1285 }
 0x495   : > { %v1287_v47 = vsub.f32 %v1283_v25, %v1286_v46 }
 0x497   : > { %v1288_v48 = vmul.f32 1.442695, %v1287_v47 }
 0x499   : > { %2495 = vpow2.f32 %v1288_v48 }
 0x49c   : > { %v2494_v49 = vpop.eup %2493  ;;  %v1410_v51 = vpop.xlane.xlu1 %1409 }
 0x49d   : > { %v1176_v50 = vsel %vm1120_vm5, %v2494_v49, 0.0  ;;  %v1411_v60 = vsub.f32 %v1407_v32, %v1410_v51 }
 0x49e   : > { %1177 = vadd.xlane.f32.xlu1 %v1176_v50 }
 0x49f   : > { %v1412_v61 = vmul.f32 1.442695, %v1411_v60 }
 0x4a4   : > { %v1534_v52 = vpop.xlane.xlu1 %1533 }
 0x4a5   : > { %v1535_v53 = vsub.f32 %v1531_v39, %v1534_v52  ;;  %v2141_v52 = vld [vmem:[#allocation20] ss:$0 sm:$0xff] }
 0x4a6   : > { %v2496_v54 = vpop.eup %2495 }
 0x4a7   : > { %v1536_v55 = vmul.f32 1.442695, %v1535_v53  ;;  %v1290_v56 = vsel %vm1120_vm5, %v2496_v54, 0.0 }
 0x4a8   : > { %1291 = vadd.xlane.f32.xlu0 %v1290_v56 }
 0x4a9   : > { %2497 = vpow2.f32 %v1536_v55 }
 0x4aa   : > { %2499 = vpow2.f32 %v1412_v61 }
 0x4af   : > { %1299 = vrot.lane.b32.xlu1 %v2480_v57, %s2919_s27  ;;  %s1879_s27 = sshll.u32 %s812_s13, 4  ;;  %s3418_s27 = int_to_ptr.vmem [resolvable:$true] %s1879_s27 }
 0x4b0   : > { %s2801_s20 = scalar_lea.vmem %s3418_s27, 128 }
 0x4b1   : > { %p2802_p0 = scmp.ne.s32.totalorder %s3418_s27, %s2801_s20 }
 0x4b3   : > { %p2803_p7 = pnand %p2802_p0, %p3190_p3 }
 0x4b5   : > { %p2804_p2 = pneg %p2803_p7 }
 0x4b6   : > { %v2498_v58 = vpop.eup %2497 }
 0x4b7   : > { %v1538_v59 = vsel %vm1120_vm5, %v2498_v58, 0.0  ;;  %v2500_v63 = vpop.eup %2499 }
 0x4b8   : > { %1539 = vadd.xlane.f32.xlu0 %v1538_v59  ;;  %v1414_v1 = vsel %vm1120_vm5, %v2500_v63, 0.0 }
 0x4ce   : > { %1423 = vrot.lane.b32.xlu0 %v2481_v62, %s2918_s15  ;;  %s3538_s15 = sld [smem:[#allocation47_spill]] }
 0x4d3   : > { %1415 = vadd.xlane.f32.xlu1 %v1414_v1 }
 0x4e4   : > { %1547 = vrot.lane.b32.xlu1 %v2482_v2, %s2920_s19  ;;  %v2485_v2 = vld [vmem:[%s3537_s7 + $0x8] sm:$0xff]  }
 0x527   : > { %v1178_v3 = vpop.xlane.xlu1 %1177 }
 0x528   : > { %2501 = vrcp.f32 %v1178_v3 }
 0x52b   : > { %v1300_v7 = vpop.permute.xlu1 %1299 }
 0x52c   : > { %v1305_v10 = vsel %vm1124_vm3, %v1300_v7, 0  ;;  %v2145_v7 = vld [vmem:[#allocation21] ss:$0 sm:$0xff] }
 0x531   : > { %v1292_v4 = vpop.xlane.xlu0 %1291 }
 0x532   : > { %2503 = vrcp.f32 %v1292_v4 }
 0x535   : > { %v2502_v5 = vpop.eup %2501 }
 0x536   : > { %v1180_v6 = vmul.f32 %v2502_v5, %v2494_v49 }
 0x538   : > { %v1181_v8 = vpack.c.bf16 %v1180_v6, %v1180_v6 }
 0x53a   : > { %2233 = vmatmul.mubr.msk.bf16.vlgmr.msra.gmra.mxu0 %vm1120_vm5, %v1181_v8 }
 0x53b   : > { %2243 = vmatpush3.bf16.msra.mxu0 %v1305_v10  ;;  %2244 = vmatprep.mubr.msk.bf16.mxu0 %vm2917_vm1, %v2916_v9  ;;  %v2146_v10 = vld [vmem:[#allocation23] ss:$0 sm:$0xff] }
 0x53c   : > { %2254 = vmatprep.subr.bf16.mxu0 %v2916_v9 }
 0x53f   : > { %v2504_v11 = vpop.eup %2503 }
 0x540   : > { %v1294_v12 = vmul.f32 %v2504_v11, %v2496_v54 }
 0x541   : > { %v1540_v13 = vpop.xlane.xlu0 %1539 }
 0x542   : > { %v1295_v14 = vpack.c.bf16 %v1294_v12, %v1294_v12 }
 0x544   : > { %2245 = vmatmul.mubr.msk.bf16.vlgmr.msra.gmra.mxu0 %vm1120_vm5, %v1295_v14  ;;  %v2487_v14 = vld [vmem:[%s3538_s15 + $0x18] sm:$0xff]  }
 0x545   : > { %v1424_v15 = vpop.permute.xlu0 %1423  ;;  %2256 = vmatprep.mubr.msk.bf16.mxu0 %vm2917_vm1, %v2916_v9 }
 0x546   : > { %v1429_v16 = vsel %vm1124_vm3, %v1424_v15, 0  ;;  %v2488_v15 = vld [vmem:[%s3538_s15 + $0x10] sm:$0xff]  }
 0x547   : > { %2255 = vmatpush3.bf16.msra.mxu0 %v1429_v16  ;;  %v2489_v16 = vld [vmem:[%s3538_s15 + $0x8] sm:$0xff]  }
 0x548   : > { %2266 = vmatprep.subr.bf16.mxu0 %v2916_v9 }
 0x55c   : > { %v1416_v17 = vpop.xlane.xlu1 %1415 }
 0x55d   : > { %2505 = vrcp.f32 %v1416_v17  ;;  %v2490_v17 = vld [vmem:[%s3538_s15] sm:$0xff]  }
 0x55e   : > { %2507 = vrcp.f32 %v1540_v13 }
 0x560   : > { %v1548_v20 = vpop.permute.xlu1 %1547 }
 0x561   : > { %v1553_v23 = vsel %vm1124_vm3, %v1548_v20, 0 }
 0x56a   : > { %v2506_v18 = vpop.eup %2505 }
 0x56b   : > { %v1418_v19 = vmul.f32 %v2506_v18, %v2500_v63  ;;  %v2508_v22 = vpop.eup %2507 }
 0x56c   : > { %v1542_v24 = vmul.f32 %v2508_v22, %v2498_v58 }
 0x56d   : > { %v1419_v21 = vpack.c.bf16 %v1418_v19, %v1418_v19 }
 0x56e   : > { %v1543_v25 = vpack.c.bf16 %v1542_v24, %v1542_v24 }
 0x56f   : > { %2257 = vmatmul.mubr.msk.bf16.vlgmr.msra.gmra.mxu0 %vm1120_vm5, %v1419_v21 }
 0x570   : > { %2267 = vmatpush3.bf16.msra.mxu0 %v1553_v23  ;;  %2268 = vmatprep.mubr.msk.bf16.mxu0 %vm2917_vm1, %v2916_v9 }
 0x571   : > { %2280 = vmatprep.subr.bf16.mxu0 %v2916_v9 }
 0x577   : > { %2269 = vmatmul.mubr.msk.bf16.vlgmr.msra.gmra.mxu0 %vm1120_vm5, %v1543_v25 }
 0x578   : > { %2284 = vmatprep.mubr.msk.bf16.mxu0 %vm2917_vm1, %v2916_v9  ;;  %2281 = vmatpush3.bf16.msra.mxu0 %v2485_v2 }
 0x579   : > { %2282 = vmatprep.subr.bf16.mxu0 %v2916_v9 }
 0x5fa   : > { %v1222_v26 = vpop.f32.mrf.mxu0 }
 0x5fb   : > { %v1228_v27 = vpack.c.bf16 %v1222_v26, %v1222_v26 }
 0x5fc   : > { %v2234_v28 = vpop.f32.mrf.mxu0 }
 0x5fd   : > { %1230 = vst.msk [vmem:[#allocation5] sm:$0xf] %vm959_vm4, %v1228_v27 }
 0x5fe   : > { %v1225_v29 = vpop.f32.mrf.mxu0 }
 0x600   : > { %v2235_v30 = vpop.f32.mrf.mxu0 }
 0x604   : > { %v1341_v31 = vpop.f32.mrf.mxu0 }
 0x605   : > { %v2161_v32 = vpack.c.bf16 %v1341_v31, %v1341_v31 }
 0x606   : > { %v2246_v33 = vpop.f32.mrf.mxu0 }
 0x607   : > { %1351 = vrot.lane.b32.xlu1 %v2161_v32, %s2921_s17  ;;  %v2151_v33 = vld [vmem:[%s3540_s21] ss:$0 sm:$0xff]  ;;  %s2924_s17 = smov [#allocation24]  }
 0x608   : > { %v1344_v34 = vpop.f32.mrf.mxu0 }
 0x60a   : > { %v2247_v35 = vpop.f32.mrf.mxu0 }
 0x62f   : > { %v1465_v37 = vpop.f32.mrf.mxu0 }
 0x630   : > { %v2162_v39 = vpack.c.bf16 %v1465_v37, %v1465_v37 }
 0x631   : > { %v2258_v40 = vpop.f32.mrf.mxu0 }
 0x632   : > { %1475 = vrot.lane.b32.xlu0 %v2162_v39, %s2922_s9  ;;  %s2805_s9 = sshll.u32 %s2924_s17, 4  ;;  %s2806_s9 = int_to_ptr.vmem [resolvable:$false] %s2805_s9 }
 0x633   : > { %v1468_v41 = vpop.f32.mrf.mxu0  ;;  %p2808_p5 = scmp.lt.s32.totalorder %s3418_s27, %s2806_s9 }
 0x635   : > { %v2259_v42 = vpop.f32.mrf.mxu0 }
 0x637   : > { %v1589_v43 = vpop.f32.mrf.mxu0 }
 0x638   : > { %v2163_v44 = vpack.c.bf16 %v1589_v43, %v1589_v43 }
 0x639   : > { %v2270_v45 = vpop.f32.mrf.mxu0 }
 0x63a   : > { %1599 = vrot.lane.b32.xlu1 %v2163_v44, %s2923_s4  ;;  %s3539_s4 = sld [smem:[#allocation46_spill]] }
 0x63b   : > { %v1592_v46 = vpop.f32.mrf.mxu0 }
 0x63d   : > { %v2271_v47 = vpop.f32.mrf.mxu0 }
 0x640   : > { %v2147_v18 = vld [vmem:[%s3539_s4] ss:$0 sm:$0xff]  ;;  %s2807_s4 = scalar_lea.vmem %s2806_s9, 256 }
 0x641   : > { %p2809_p9 = scmp.lt.s32.totalorder %s2807_s4, %s2801_s20 }
 0x643   : > { %p2810_p6 = por %p2809_p9, %p2808_p5 }
 0x645   : > { %p2811_p10 = pnand %p2810_p6, %p2804_p2 }
 0x679   : > { %v1352_v48 = vpop.permute.xlu1 %1351 }
 0x67a   : > { %1355 = vst.msk [vmem:[#allocation5] sm:$0xf] %vm1354_vm6, %v1352_v48 }
 0x6a4   : > { %v1476_v49 = vpop.permute.xlu0 %1475 }
 0x6a5   : > { %1479 = vst.msk [vmem:[#allocation5] sm:$0xf] %vm1478_vm7, %v1476_v49 }
 0x6ac   : > { %v1600_v50 = vpop.permute.xlu1 %1599 }
 0x6ad   : > { %1603 = vst.msk [vmem:[#allocation5] sm:$0xf] %vm1602_vm8, %v1600_v50 }
 0x6b4   : > { %v1604_v51 = vld [vmem:[#allocation5] sm:$0xf] }
 0x6b5   : > { %2277 = vmatmul.mubr.msk.bf16.vlgmr.msra.gmra.mxu1 %vm828_vm0, %v1604_v51 }
 0x6b6   : > { %2296 = vmatprep.mubr.msk.bf16.mxu1 %vm2917_vm1, %v2916_v9  ;;  %2289 = vmatpush3.bf16.msra.mxu1 %v2487_v14 }
 0x6b7   : > { %2290 = vmatprep.subr.bf16.mxu1 %v2916_v9 }
 0x6ba   : > { %2291 = vmatpush3.bf16.msra.mxu1 %v2488_v15 }
 0x6bb   : > { %2292 = vmatprep.subr.bf16.mxu1 %v2916_v9 }
 0x6be   : > { %2293 = vmatpush3.bf16.msra.mxu1 %v2489_v16 }
 0x6bf   : > { %2294 = vmatprep.subr.bf16.mxu1 %v2916_v9 }
 0x6c2   : > { %2295 = vmatpush3.bf16.msra.mxu1 %v2490_v17 }
 0x775   : > { %v1665_v53 = vpop.f32.mrf.mxu1 }
 0x776   : > { %v1666_v54 = vadd.f32 %v2141_v52, %v1665_v53 }
 0x777   : > { %v2278_v55 = vpop.f32.mrf.mxu1 }
 0x778   : > { %v3375_v56 = vadd.f32 %v1666_v54, %v3258_v0  ;;  %v2486_v0 = vld [vmem:[%s3537_s7] sm:$0xff]  }
 0x779   : > { %v1668_v57 = vpop.f32.mrf.mxu1  ;;  %2283 = vmatpush3.bf16.msra.mxu0 %v2486_v0 }
 0x77a   : > { %v1674_v58 = vsel %vm828_vm0, %v3375_v56, 0.0 }
 0x77b   : > { %1675 = vadd.xlane.f32.xlu0 %v1674_v58  ;;  %v2279_v59 = vpop.f32.mrf.mxu1 }
 0x804   : > { %v1676_v60 = vpop.xlane.xlu0 %1675 }
 0x805   : > { %v1678_v61 = vmul.f32 0.03125, %v1676_v60 }
 0x807   : > { %v1679_v62 = vsub.f32 %v3375_v56, %v1678_v61 }
 0x809   : > { %v1680_v63 = vmul.f32 %v1679_v62, %v1679_v62 }
 0x80b   : > { %v1681_v1 = vsel %vm828_vm0, %v1680_v63, 0.0 }
 0x80c   : > { %1682 = vadd.xlane.f32.xlu1 %v1681_v1 }
 0x895   : > { %v1683_v3 = vpop.xlane.xlu1 %1682 }
 0x896   : > { %v1684_v4 = vmul.f32 0.03125, %v1683_v3 }
 0x898   : > { %v1685_v5 = vadd.f32 1e-05, %v1684_v4 }
 0x89a   : > { %2509 = vrsqrt.f32 %v1685_v5 }
 0x8a7   : > { %v2510_v6 = vpop.eup %2509 }
 0x8a8   : > { %v1687_v8 = vmul.f32 %v2510_v6, %v1679_v62 }
 0x8aa   : > { %v1694_v11 = vmul.f32 %v2145_v7, %v1687_v8 }
 0x8ac   : > { %v1701_v12 = vadd.f32 %v2146_v10, %v1694_v11 }
 0x8ae   : > { %v1702_v13 = vpack.c.bf16 %v1701_v12, %v1701_v12 }
 0x8b0   : > { %2285 = vmatmul.mubr.msk.bf16.vlgmr.msra.gmra.mxu0 %vm828_vm0, %v1702_v13 }
 0x970   : > { %v1763_v19 = vpop.f32.mrf.mxu0 }
 0x971   : > { %v1764_v20 = vadd.f32 %v2147_v18, %v1763_v19 }
 0x972   : > { %v2286_v21 = vpop.f32.mrf.mxu0 }
 0x973   : > { %v1770_v22 = vmul.f32 0.044715, %v1764_v20  ;;  %v1769_v9 = vmul.f32 0.5, %v1764_v20 }
 0x974   : > { %v1766_v23 = vpop.f32.mrf.mxu0 }
 0x975   : > { %v1771_v24 = vmul.f32 %v1770_v22, %v1764_v20 }
 0x976   : > { %v2287_v25 = vpop.f32.mrf.mxu0 }
 0x977   : > { %v1772_v26 = vmul.f32 %v1771_v24, %v1764_v20 }
 0x979   : > { %v1773_v27 = vadd.f32 %v1772_v26, %v1764_v20 }
 0x97b   : > { %v1774_v28 = vmul.f32 0.7978846, %v1773_v27 }
 0x97d   : > { %2511 = vtanh.f32 %v1774_v28 }
 0x98a   : > { %v2512_v29 = vpop.eup %2511 }
 0x98b   : > { %v1776_v30 = vadd.f32 1.0, %v2512_v29 }
 0x98d   : > { %v1777_v31 = vmul.f32 %v1776_v30, %v1769_v9 }
 0x98f   : > { %v1778_v32 = vpack.c.bf16 %v1777_v31, %v1777_v31 }
 0x991   : > { %2297 = vmatmul.mubr.msk.bf16.vlgmr.msra.gmra.mxu1 %vm1818_vm9, %v1778_v32 }
 0xa51   : > { %v1856_v34 = vpop.f32.mrf.mxu1 }
 0xa52   : > { %v1857_v35 = vadd.f32 %v2151_v33, %v1856_v34 }
 0xa53   : > { %v2298_v36 = vpop.f32.mrf.mxu1 }
 0xa54   : > { %v1862_v37 = vadd.f32 %v1857_v35, %v3375_v56 }
 0xa55   : > { %v1859_v38 = vpop.f32.mrf.mxu1 }
 0xa56   : > { %1863 = vst.msk [vmem:[%s812_s13] sm:$0xff] %vm828_vm0, %v1862_v37 }
 0xa57   : > { %v2299_v39 = vpop.f32.mrf.mxu1 }
 0xa58   : > { %2814 = shalt.err (!%p2811_p10)
}
 0xa59   : > { %s2815_s28 = scalar_lea.hbm %s3416_s29, 128  ;;  %s2819_s14 = scalar_lea.hbm %s3541_s18, 256 }
 0xa5a   : > { %p2816_p11 = scmp.ne.s32.totalorder %s3416_s29, %s2815_s28  ;;  %p2820_p13 = scmp.lt.s32.totalorder %s3416_s29, %s3541_s18 }
 0xa5b   : > { %p2821_p12 = scmp.lt.s32.totalorder %s2819_s14, %s2815_s28 }
 0xa5c   : > { %p2817_p8 = pnand %p2816_p11, %p3190_p3 }
 0xa5d   : > { %p2822_p0 = por %p2821_p12, %p2820_p13 }
 0xa5e   : > { %p2818_p1 = pneg %p2817_p8 }
 0xa60   : > { %p2823_p7 = pnand %p2822_p0, %p2818_p1 }
 0xa62   : > { %2826 = shalt.err (!%p2823_p7)
}
 0xa63   : > { %2342 = dma.vmem_to_hbm [thread:$0]  (%p3190_p3), %s3418_s27, 128, %s3416_s29, %s1865_s24  }
 0xa64 PF: > { %s1891_s13 = sand.u32 1, %s2881_s1   ;;  %p3542_p2 = scmp.ge.s32.totalorder %s2901_s25, 2 }
 0xa65   : > { %s1892_s19 = scalar_lea.sflag [#allocation8], %s1891_s13 }
 0xa66   : > { %p2380_p5 = pnand %p3542_p2, %p3197_p4 }
 0xa68   : > { %p2381_p9 = pneg %p2380_p5 }
 0xa6a   : > { %2876 = dma.done.wait (%p2381_p9), %s1892_s19, 128  }
 0xa6b   : > { %2878 = vsyncadd (%p2381_p9), %s1892_s19, 4294967168  ;;  %s41_s25 = sadd.s32 1, %s2901_s25   ;;  %s3543_s1 = smov %s2885_s22 }
 0xa6c   : > { %p38_p6 = scmp.ge.s32.totalorder %s41_s25, 4   ;;  %s3544_s22 = smov %s2889_s23 }
 0xa6d   : > { %s3545_s23 = smov %s3195_s5  ;;  %s3546_s24 = smov %s2897_s2 }
 0xa6e   : > { %s3547_s2 = smov %s3549_s16  ;;  %40 = sbr.rel (!%p38_p6) target bundleno = 30 (0x1e), region = 197 }
 0xa73   :  { %1897 = vsyncpa [#allocation7], 1 }
 0xa74   :  { %1899 = vsyncpa [#allocation7 + $0x1], 1 }
 0xa75   :  { %1900 = vsyncpa [#allocation10], 1 }
 0xa76   :  { %1901 = vsyncpa [#allocation13], 1 }
 0xa77   :  { %1902 = vsyncpa [#allocation16], 1 }
 0xa78   :  { %1903 = vsyncpa [#allocation19], 1 }
 0xa79   :  { %1904 = vsyncpa [#allocation22], 1 }
 0xa7a   :  { %1905 = vsyncpa [#allocation8], 1 }
 0xa7b   :  { %1907 = vsyncpa [#allocation8 + $0x1], 1 }

</bundles_post_ra>
